<compile_context>
chip_gen: v7x
topology: tpu7x:2x2x1
jax: 0.10.0
libtpu: 0.0.40
codegen_flags: <defaults>
</compile_context>

<pallas_src>
import functools
import numpy as np
import jax
import jax.numpy as jnp
from jax.experimental import pallas as pl
from jax.experimental.pallas import tpu as pltpu

ATOM_FEATURE_DIMS = [119, 4, 12, 12, 10, 6, 6, 2, 2]  # OGB AtomEncoder tables


# ---------------------------------------------------------------------------
# Helpers
# ---------------------------------------------------------------------------
def _round_up(x, m):
    return ((x + m - 1) // m) * m


def _full_map(ndim):
    return lambda *_: (0,) * ndim


def _fold_bn(bn, eps=1e-5):
    # eval-mode BatchNorm1d folded to a single scale/shift
    scale = bn['gamma'] * jax.lax.rsqrt(bn['running_var'] + eps)
    shift = bn['beta'] - bn['running_mean'] * scale
    return scale.reshape(1, -1), shift.reshape(1, -1)


def _choose_tile_n(n):
    # 16-aligned (bf16 sublane pack); aim for >=2 node tiles (v7x has 2 TCs); cap at 256
    if n <= 16:
        return 16
    return int(min(256, _round_up((n + 1) // 2, 16)))


# ---------------------------------------------------------------------------
# Kernels
# ---------------------------------------------------------------------------
def _embed_kernel(h_ref, p_ref, w_ref, b_ref, o_ref):
    # h = AtomEncoder(h) + embedding_p(p)    (pe_init == 'lap_pe')
    o_ref[...] = (h_ref[...]
                  + jnp.dot(p_ref[...], w_ref[...], preferred_element_type=jnp.float32)
                  + b_ref[...])


def _pna_layer_kernel(h_ref, nbr_ref, deg_ref, snorm_ref,
                      wps_ref, wpd_ref, bpre_ref,
                      wph_ref, wacat_ref, bpost_ref,
                      bns_ref, bnb_ref,
                      o_ref, *,
                      dmax, avg_d_log, inv_avg_d_log,
                      graph_norm, batch_norm, residual):
    f32, bf16 = jnp.float32, jnp.bfloat16
    h = h_ref[...]                                   # (TN, H) f32
    tn, hdim = h.shape
    hb = h.astype(bf16)
    deg = deg_ref[...]                               # (TN, 1) f32, in-degree per node

    # pretrans destination half: msg[j] = src_j @ W_src + (h @ W_dst + b).
    # hd is constant across slots, so it is folded back in AFTER the reduction:
    # mean/max/min(msg) = (...)(src) + hd ; std(msg) = std(src).
    hd = jnp.dot(hb, wpd_ref[...], preferred_element_type=f32) + bpre_ref[...]

    # pretrans source half: ONE batched MXU matmul over the whole neighbour slab
    nbr_cat = jnp.concatenate([nbr_ref[j] for j in range(dmax)], axis=0)   # (dmax*TN, H) bf16
    src_all = jnp.dot(nbr_cat, wps_ref[...], preferred_element_type=f32)   # (dmax*TN, H) f32

    big = 1e30
    s1 = jnp.zeros((tn, hdim), f32)
    s2 = jnp.zeros((tn, hdim), f32)
    mx = jnp.full((tn, hdim), -big, f32)
    mn = jnp.full((tn, hdim), big, f32)
    for j in range(dmax):                            # dmax small & static -> unrolled VPU reduce
        src_j = src_all[j * tn:(j + 1) * tn]         # (TN, H), aligned static row slice
        valid = deg > float(j)                       # (TN, 1); slots are filled densely per node
        mk = valid.astype(f32)
        s1 = s1 + src_j * mk
        s2 = s2 + src_j * src_j * mk
        mx = jnp.maximum(mx, jnp.where(valid, src_j, -big))
        mn = jnp.minimum(mn, jnp.where(valid, src_j, big))

    # PNA aggregation: mean / max / min / std  (EPS = 1e-5, zero-degree -> zero agg as in DGL)
    deg_c = jnp.maximum(deg, 1.0)
    rdeg = pl.reciprocal(deg_c, approx=True)         # EUP, frees VPU slots
    mean_src = s1 * rdeg
    var = jnp.maximum(s2 * rdeg - mean_src * mean_src, 0.0)
    has_in = deg > 0.0
    std = jnp.where(has_in, jnp.sqrt(var + 1e-5), 0.0)
    mean = jnp.where(has_in, mean_src + hd, 0.0)
    mx = jnp.where(has_in, mx + hd, 0.0)
    mn = jnp.where(has_in, mn + hd, 0.0)
    agg = jnp.concatenate([mean, mx, mn, std], axis=-1)    # (TN, 4H) -> lane-dense 128 lanes

    # scalers: identity / amplification / attenuation
    logd = jnp.log(deg + 1.0)
    amp = logd * inv_avg_d_log
    att = avg_d_log * pl.reciprocal(jnp.maximum(logd, 1e-5), approx=True)

    # posttrans as a split matmul: dot(h, W_h) + dot([agg | agg*amp | agg*att], W_a_cat)
    agg3 = jnp.concatenate([agg, agg * amp, agg * att], axis=-1).astype(bf16)  # (TN, 12H)
    y = jnp.dot(hb, wph_ref[...], preferred_element_type=f32)
    y = y + jnp.dot(agg3, wacat_ref[...], preferred_element_type=f32)
    y = y + bpost_ref[...]

    if graph_norm:
        y = y * snorm_ref[...]
    if batch_norm:                                   # pre-folded eval BatchNorm
        y = y * bns_ref[...] + bnb_ref[...]
    y = jnp.maximum(y, 0.0)
    if residual:                                     # only when in_dim == out_dim
        y = h + y
    o_ref[...] = y
    # TODO(synk): dropout skipped (inference mode, dropout=0)


def _readout_mlp_kernel(rmat_ref, h_ref, w1_ref, b1_ref, w2_ref, b2_ref,
                        w3_ref, b3_ref, o_ref):
    f32 = jnp.float32
    # dgl.mean_nodes via per-graph averaging matrix, fused with MLPReadout (L=2)
    hg = jnp.dot(rmat_ref[...], h_ref[...], preferred_element_type=f32)
    y = jnp.maximum(jnp.dot(hg, w1_ref[...], preferred_element_type=f32) + b1_ref[...], 0.0)
    y = jnp.maximum(jnp.dot(y, w2_ref[...], preferred_element_type=f32) + b2_ref[...], 0.0)
    o_ref[...] = jnp.dot(y, w3_ref[...], preferred_element_type=f32) + b3_ref[...]


# ---------------------------------------------------------------------------
# Pallas wrappers
# ---------------------------------------------------------------------------
def embed_pe(h_atom, p, w, b, *, tile_n):
    np_, hdim = h_atom.shape
    pdim = p.shape[1]
    node2 = lambda i: (i, 0)
    return pl.pallas_call(
        _embed_kernel,
        out_shape=jax.ShapeDtypeStruct((np_, hdim), jnp.float32),
        grid=(np_ // tile_n,),
        in_specs=[pl.BlockSpec((tile_n, hdim), node2),
                  pl.BlockSpec((tile_n, pdim), node2),
                  pl.BlockSpec((pdim, hdim), _full_map(2)),
                  pl.BlockSpec((1, hdim), _full_map(2))],
        out_specs=pl.BlockSpec((tile_n, hdim), node2),
        compiler_params=pltpu.CompilerParams(dimension_semantics=("parallel",)),
    )(h_atom, p, w, b)


def pna_layer(lp, h, snorm_pad, deg_pad, graph, cfg):
    np_, hdim = h.shape
    nbr_idx = graph['nbr_idx']                       # (Dmax, Np) int32
    dmax = nbr_idx.shape[0]
    # Neighbour gather stays in XLA glue; slab is bf16 to halve its HBM round trip.
    # TODO(synk): an in-kernel DMA row gather (PrefetchScalarGridSpec + make_async_copy)
    #             would remove the slab write entirely.
    nbr_h = jnp.take(h.astype(jnp.bfloat16), nbr_idx.reshape(-1), axis=0
                     ).reshape(dmax, np_, hdim)

    od = lp['w_h'].shape[1]
    residual = cfg['residual'] and (hdim == od)
    tile_n = cfg['tile_n']

    kern = functools.partial(
        _pna_layer_kernel, dmax=dmax,
        avg_d_log=cfg['avg_d_log'], inv_avg_d_log=1.0 / cfg['avg_d_log'],
        graph_norm=cfg['graph_norm'], batch_norm=cfg['batch_norm'],
        residual=residual)

    node2 = lambda i: (i, 0)
    node3 = lambda i: (0, i, 0)
    full2 = _full_map(2)
    return pl.pallas_call(
        kern,
        out_shape=jax.ShapeDtypeStruct((np_, od), jnp.float32),
        grid=(np_ // tile_n,),
        in_specs=[
            pl.BlockSpec((tile_n, hdim), node2),          # h (f32, residual fidelity)
            pl.BlockSpec((dmax, tile_n, hdim), node3),    # neighbour slab (bf16)
            pl.BlockSpec((tile_n, 1), node2),             # in-degree
            pl.BlockSpec((tile_n, 1), node2),             # snorm_n
            pl.BlockSpec((hdim, hdim), full2),            # W_pre_src (bf16)
            pl.BlockSpec((hdim, hdim), full2),            # W_pre_dst (bf16)
            pl.BlockSpec((1, hdim), full2),               # b_pre
            pl.BlockSpec((hdim, od), full2),              # W_post_h (bf16)
            pl.BlockSpec((12 * hdim, od), full2),         # W_post [id|amp|att] (bf16)
            pl.BlockSpec((1, od), full2),                 # b_post
            pl.BlockSpec((1, od), full2),                 # bn scale
            pl.BlockSpec((1, od), full2),                 # bn shift
        ],
        out_specs=pl.BlockSpec((tile_n, od), node2),
        compiler_params=pltpu.CompilerParams(
            dimension_semantics=("parallel",),
            vmem_limit_bytes=32 * 1024 * 1024),
    )(h, nbr_h, deg_pad, snorm_pad,
      lp['w_src'], lp['w_dst'], lp['b_pre'],
      lp['w_h'], lp['w_a_cat'], lp['b_post'],
      lp['bn_scale'], lp['bn_shift'])


def readout_mlp(rmat, h, prm):
    bsz = rmat.shape[0]
    nc = prm['mlp_w3'].shape[1]
    args = (rmat, h,
            prm['mlp_w1'], prm['mlp_b1'], prm['mlp_w2'], prm['mlp_b2'],
            prm['mlp_w3'], prm['mlp_b3'])
    return pl.pallas_call(
        _readout_mlp_kernel,
        out_shape=jax.ShapeDtypeStruct((bsz, nc), jnp.float32),
        grid=(1,),
        in_specs=[pl.BlockSpec(a.shape, _full_map(a.ndim)) for a in args],
        out_specs=pl.BlockSpec((bsz, nc), _full_map(2)),
    )(*args)


# ---------------------------------------------------------------------------
# Parameter preparation (host-side, outside jit) & model forward
# ---------------------------------------------------------------------------
def prepare_params(raw, hidden_dim):
    """Split / pre-cast weights to bf16, fold eval BatchNorm, reshape biases (once)."""
    bf16 = jnp.bfloat16
    prm = dict(
        atom_tables=raw['atom_tables'],
        emb_p_w=raw['emb_p_w'],
        emb_p_b=raw['emb_p_b'].reshape(1, -1),
        mlp_w1=raw['mlp_w1'], mlp_b1=raw['mlp_b1'].reshape(1, -1),
        mlp_w2=raw['mlp_w2'], mlp_b2=raw['mlp_b2'].reshape(1, -1),
        mlp_w3=raw['mlp_w3'], mlp_b3=raw['mlp_b3'].reshape(1, -1),
    )
    layers = []
    for lp in raw['layers']:
        h = hidden_dim
        w_pre = lp['pretrans_w']                 # (2H, H): rows [0:H]=src, [H:2H]=dst
        w_post = lp['posttrans_w']               # (13H, Od): [h | id-agg | amp-agg | att-agg]
        bn_scale, bn_shift = _fold_bn(lp['bn'])
        layers.append(dict(
            w_src=w_pre[:h].astype(bf16),
            w_dst=w_pre[h:].astype(bf16),
            b_pre=lp['pretrans_b'].reshape(1, -1),
            w_h=w_post[:h].astype(bf16),
            w_a_cat=w_post[h:].astype(bf16),     # (12H, Od): [id|amp|att] matches agg3 layout
            b_post=lp['posttrans_b'].reshape(1, -1),
            bn_scale=bn_scale, bn_shift=bn_shift,
        ))
    prm['layers'] = layers
    return prm


def atom_encoder(h_int, tables):
    # OGB AtomEncoder: sum of per-feature embedding lookups (gathers stay in glue)
    out = jnp.zeros((h_int.shape[0], tables[0].shape[1]), jnp.float32)
    for i, tbl in enumerate(tables):
        out = out + jnp.take(tbl, h_int[:, i], axis=0)
    return out


def pna_net_forward(prm, graph, h_int, p_pad, snorm_pad, deg_pad, cfg):
    np_ = graph['readout_mat'].shape[1]
    n_real = h_int.shape[0]
    h_atom = atom_encoder(h_int, prm['atom_tables'])          # embedding_h
    h_atom = jnp.pad(h_atom, ((0, np_ - n_real), (0, 0)))
    h = embed_pe(h_atom, p_pad, prm['emb_p_w'], prm['emb_p_b'], tile_n=cfg['tile_n'])
    for lyr in prm['layers']:
        h = pna_layer(lyr, h, snorm_pad, deg_pad, graph, cfg)
    return readout_mlp(graph['readout_mat'], h, prm)          # mean readout + MLPReadout


# ---------------------------------------------------------------------------
# Deterministic setup & run
# ---------------------------------------------------------------------------
def _dense(key, fan_in, fan_out):
    k1, k2 = jax.random.split(key)
    w = jax.random.normal(k1, (fan_in, fan_out), jnp.float32) * (1.0 / np.sqrt(fan_in))
    b = jax.random.normal(k2, (fan_out,), jnp.float32) * 0.01
    return w, b


if __name__ == "__main__":
    hidden_dim = 32
    out_dim = 32
    n_classes = 2
    pos_enc_dim = 8
    n_layers = 2
    n_agg, n_scal = 4, 3
    cfg = dict(graph_norm=True, batch_norm=True, residual=True)

    # ---- build a batch of 3 small directed graphs (bidirectional rings + extras) ----
    graph_sizes = [14, 11, 9]
    src_list, dst_list, snorm = [], [], []
    offset = 0
    for gi, n in enumerate(graph_sizes):
        for i in range(n):
            a, b = offset + i, offset + (i + 1) % n
            src_list += [a, b]
            dst_list += [b, a]
        # one extra edge per graph so in-degrees vary (exercises masking / scalers)
        src_list.append(offset + 0)
        dst_list.append(offset + (3 % n))
        snorm += [1.0 / np.sqrt(n)] * n
        offset += n
    N = sum(graph_sizes)
    B = len(graph_sizes)

    in_deg = np.zeros(N, np.int64)
    for d in dst_list:
        in_deg[d] += 1
    Dmax = int(in_deg.max())
    avg_d_log = float(np.mean(np.log(in_deg + 1.0)))

    tile_n = _choose_tile_n(N)                # 16-aligned node tile; >=2 tiles when N allows
    Np = _round_up(N, tile_n)

    # per-destination neighbour table: nbr_idx[j, d] = src of j-th in-edge of node d
    # (slots filled densely 0..deg-1, so the kernel's `deg > j` mask is exact)
    nbr_idx = np.zeros((Dmax, Np), np.int32)
    fill = np.zeros(N, np.int32)
    for s, d in zip(src_list, dst_list):
        nbr_idx[fill[d], d] = s
        fill[d] += 1

    readout_mat = np.zeros((B, Np), np.float32)
    off = 0
    for gi, n in enumerate(graph_sizes):
        readout_mat[gi, off:off + n] = 1.0 / n
        off += n

    snorm_pad = np.zeros((Np, 1), np.float32)
    snorm_pad[:N, 0] = np.asarray(snorm, np.float32)
    deg_pad = np.zeros((Np, 1), np.float32)
    deg_pad[:N, 0] = in_deg.astype(np.float32)

    graph = dict(
        nbr_idx=jnp.array(nbr_idx),
        readout_mat=jnp.array(readout_mat),
    )
    cfg['avg_d_log'] = avg_d_log
    cfg['tile_n'] = tile_n

    # ---- deterministic inputs ----
    key = jax.random.PRNGKey(0)
    kh, kp = jax.random.split(key)
    cols = [jax.random.randint(jax.random.fold_in(kh, i), (N,), 0, d, dtype=jnp.int32)
            for i, d in enumerate(ATOM_FEATURE_DIMS)]
    h_int = jnp.stack(cols, axis=1)                                    # (N, 9) atom features
    p = jax.random.normal(kp, (N, pos_enc_dim), jnp.float32)           # (N, 8) lap PE
    p_pad = jnp.zeros((Np, pos_enc_dim), jnp.float32).at[:N].set(p)
    snorm_pad = jnp.array(snorm_pad)
    deg_pad = jnp.array(deg_pad)

    # ---- deterministic parameters ----
    raw = {}
    pk = jax.random.PRNGKey(1)
    raw['atom_tables'] = [
        jax.random.normal(jax.random.fold_in(pk, i), (d, hidden_dim), jnp.float32) * 0.1
        for i, d in enumerate(ATOM_FEATURE_DIMS)
    ]
    k = jax.random.PRNGKey(2)
    k, s = jax.random.split(k)
    raw['emb_p_w'], raw['emb_p_b'] = _dense(s, pos_enc_dim, hidden_dim)

    layers = []
    for li in range(n_layers):
        in_dim = hidden_dim
        od = hidden_dim if li < n_layers - 1 else out_dim
        k, s1 = jax.random.split(k)
        pre_w, pre_b = _dense(s1, 2 * in_dim, in_dim)
        k, s2 = jax.random.split(k)
        post_w, post_b = _dense(s2, (n_agg * n_scal + 1) * in_dim, od)
        bn = dict(gamma=jnp.ones((od,), jnp.float32),
                  beta=jnp.zeros((od,), jnp.float32),
                  running_mean=jnp.zeros((od,), jnp.float32),
                  running_var=jnp.ones((od,), jnp.float32))
        layers.append(dict(pretrans_w=pre_w, pretrans_b=pre_b,
                           posttrans_w=post_w, posttrans_b=post_b, bn=bn))
    raw['layers'] = layers

    k, s = jax.random.split(k)
    raw['mlp_w1'], raw['mlp_b1'] = _dense(s, out_dim, out_dim // 2)
    k, s = jax.random.split(k)
    raw['mlp_w2'], raw['mlp_b2'] = _dense(s, out_dim // 2, out_dim // 4)
    k, s = jax.random.split(k)
    raw['mlp_w3'], raw['mlp_b3'] = _dense(s, out_dim // 4, n_classes)

    # host-side weight prep (bf16 casts, BN folding, splits) happens ONCE, outside jit
    prm = prepare_params(raw, hidden_dim)

    # ---- run (cfg is closed over so its Python scalars stay static) ----
    fwd = jax.jit(lambda prm_, g, hi, pp, sn, dg:
                  pna_net_forward(prm_, g, hi, pp, sn, dg, cfg))
    logits = fwd(prm, graph, h_int, p_pad, snorm_pad, deg_pad)
    logits = jax.block_until_ready(logits)
    assert logits.shape == (B, n_classes)
    assert bool(jnp.all(jnp.isfinite(logits)))
    print("KERNEL_OK")
</pallas_src>

<mosaic_0001>
module attributes {stable_mosaic.version = 11 : i64} {
  func.func @_embed_kernel(%arg0: i32, %arg1: memref<32x32xf32, #tpu.memory_space<vmem>>, %arg2: memref<32x8xf32, #tpu.memory_space<vmem>>, %arg3: memref<8x32xf32, #tpu.memory_space<vmem>>, %arg4: memref<1x32xf32, #tpu.memory_space<vmem>>, %arg5: memref<32x32xf32, #tpu.memory_space<vmem>>) attributes {dimension_semantics = [#tpu.dimension_semantics<parallel>], iteration_bounds = array<i64: 2>, scalar_prefetch = 0 : i64, scratch_operands = 0 : i64, tpu.core_type = #tpu.core_type<tc>, window_params = [{transform_indices = @transform_0, window_bounds = array<i64: 32, 32>}, {transform_indices = @transform_1, window_bounds = array<i64: 32, 8>}, {pipeline_mode = #tpu.pipeline_mode<synchronous>, transform_indices = @transform_2, window_bounds = array<i64: 8, 32>}, {pipeline_mode = #tpu.pipeline_mode<synchronous>, transform_indices = @transform_3, window_bounds = array<i64: 1, 32>}, {transform_indices = @transform_4, window_bounds = array<i64: 32, 32>}]} {
    %c0 = arith.constant 0 : index
    %c0_0 = arith.constant 0 : index
    %0 = vector.load %arg1[%c0, %c0_0] : memref<32x32xf32, #tpu.memory_space<vmem>>, vector<32x32xf32>
    %c0_1 = arith.constant 0 : index
    %c0_2 = arith.constant 0 : index
    %1 = vector.load %arg2[%c0_1, %c0_2] : memref<32x8xf32, #tpu.memory_space<vmem>>, vector<32x8xf32>
    %c0_3 = arith.constant 0 : index
    %c0_4 = arith.constant 0 : index
    %2 = vector.load %arg3[%c0_3, %c0_4] : memref<8x32xf32, #tpu.memory_space<vmem>>, vector<8x32xf32>
    %cst = arith.constant dense<0.000000e+00> : vector<32x32xf32>
    %3 = tpu.matmul %1, %2, %cst {dimension_numbers = #tpu.dot_dimension_numbers<[1], [0], [0], [1], [0, 0, 1, 1], [], []>} : vector<32x8xf32>, vector<8x32xf32>, vector<32x32xf32> -> vector<32x32xf32>
    %4 = arith.addf %0, %3 : vector<32x32xf32>
    %c0_5 = arith.constant 0 : index
    %c0_6 = arith.constant 0 : index
    %5 = vector.load %arg4[%c0_5, %c0_6] : memref<1x32xf32, #tpu.memory_space<vmem>>, vector<1x32xf32>
    %6 = vector.broadcast %5 : vector<1x32xf32> to vector<32x32xf32>
    %7 = arith.addf %4, %6 : vector<32x32xf32>
    %c0_7 = arith.constant 0 : index
    %c0_8 = arith.constant 0 : index
    %8 = vector.load %arg5[%c0_7, %c0_8] : memref<32x32xf32, #tpu.memory_space<vmem>>, vector<32x32xf32>
    tpu.vector_store %arg5[%c0_7, %c0_8], %7 {strides = array<i32>} : memref<32x32xf32, #tpu.memory_space<vmem>>, vector<32x32xf32>,
    return
  }
  func.func @transform_0(%arg0: i32) -> (i32, i32) {
    %c0_i32 = arith.constant 0 : i32
    %c0_i32_0 = arith.constant 0 : i32
    return %arg0, %c0_i32 : i32, i32
  }
  func.func @transform_1(%arg0: i32) -> (i32, i32) {
    %c0_i32 = arith.constant 0 : i32
    %c0_i32_0 = arith.constant 0 : i32
    return %arg0, %c0_i32 : i32, i32
  }
  func.func @transform_2(%arg0: i32) -> (i32, i32) {
    %c0_i32 = arith.constant 0 : i32
    %c0_i32_0 = arith.constant 0 : i32
    %c0_i32_1 = arith.constant 0 : i32
    return %c0_i32, %c0_i32_0 : i32, i32
  }
  func.func @transform_3(%arg0: i32) -> (i32, i32) {
    %c0_i32 = arith.constant 0 : i32
    %c0_i32_0 = arith.constant 0 : i32
    %c0_i32_1 = arith.constant 0 : i32
    return %c0_i32, %c0_i32_0 : i32, i32
  }
  func.func @transform_4(%arg0: i32) -> (i32, i32) {
    %c0_i32 = arith.constant 0 : i32
    %c0_i32_0 = arith.constant 0 : i32
    return %arg0, %c0_i32 : i32, i32
  }
}

module attributes {stable_mosaic.version = 11 : i64} {
  func.func @_pna_layer_kernel(%arg0: i32, %arg1: memref<32x32xf32, #tpu.memory_space<vmem>>, %arg2: memref<3x32x32xbf16, #tpu.memory_space<vmem>>, %arg3: memref<32x1xf32, #tpu.memory_space<vmem>>, %arg4: memref<32x1xf32, #tpu.memory_space<vmem>>, %arg5: memref<32x32xbf16, #tpu.memory_space<vmem>>, %arg6: memref<32x32xbf16, #tpu.memory_space<vmem>>, %arg7: memref<1x32xf32, #tpu.memory_space<vmem>>, %arg8: memref<32x32xbf16, #tpu.memory_space<vmem>>, %arg9: memref<384x32xbf16, #tpu.memory_space<vmem>>, %arg10: memref<1x32xf32, #tpu.memory_space<vmem>>, %arg11: memref<1x32xf32, #tpu.memory_space<vmem>>, %arg12: memref<1x32xf32, #tpu.memory_space<vmem>>, %arg13: memref<32x32xf32, #tpu.memory_space<vmem>>) attributes {dimension_semantics = [#tpu.dimension_semantics<parallel>], iteration_bounds = array<i64: 2>, scalar_prefetch = 0 : i64, scratch_operands = 0 : i64, tpu.core_type = #tpu.core_type<tc>, window_params = [{transform_indices = @transform_0, window_bounds = array<i64: 32, 32>}, {transform_indices = @transform_1, window_bounds = array<i64: 3, 32, 32>}, {transform_indices = @transform_2, window_bounds = array<i64: 32, 1>}, {transform_indices = @transform_3, window_bounds = array<i64: 32, 1>}, {pipeline_mode = #tpu.pipeline_mode<synchronous>, transform_indices = @transform_4, window_bounds = array<i64: 32, 32>}, {pipeline_mode = #tpu.pipeline_mode<synchronous>, transform_indices = @transform_5, window_bounds = array<i64: 32, 32>}, {pipeline_mode = #tpu.pipeline_mode<synchronous>, transform_indices = @transform_6, window_bounds = array<i64: 1, 32>}, {pipeline_mode = #tpu.pipeline_mode<synchronous>, transform_indices = @transform_7, window_bounds = array<i64: 32, 32>}, {pipeline_mode = #tpu.pipeline_mode<synchronous>, transform_indices = @transform_8, window_bounds = array<i64: 384, 32>}, {pipeline_mode = #tpu.pipeline_mode<synchronous>, transform_indices = @transform_9, window_bounds = array<i64: 1, 32>}, {pipeline_mode = #tpu.pipeline_mode<synchronous>, transform_indices = @transform_10, window_bounds = array<i64: 1, 32>}, {pipeline_mode = #tpu.pipeline_mode<synchronous>, transform_indices = @transform_11, window_bounds = array<i64: 1, 32>}, {transform_indices = @transform_12, window_bounds = array<i64: 32, 32>}]} {
    %c0 = arith.constant 0 : index
    %c0_0 = arith.constant 0 : index
    %0 = vector.load %arg1[%c0, %c0_0] : memref<32x32xf32, #tpu.memory_space<vmem>>, vector<32x32xf32>
    %1 = arith.truncf %0 : vector<32x32xf32> to vector<32x32xbf16>
    %c0_1 = arith.constant 0 : index
    %c0_2 = arith.constant 0 : index
    %2 = vector.load %arg3[%c0_1, %c0_2] : memref<32x1xf32, #tpu.memory_space<vmem>>, vector<32x1xf32>
    %c0_3 = arith.constant 0 : index
    %c0_4 = arith.constant 0 : index
    %3 = vector.load %arg6[%c0_3, %c0_4] : memref<32x32xbf16, #tpu.memory_space<vmem>>, vector<32x32xbf16>
    %cst = arith.constant dense<0.000000e+00> : vector<32x32xf32>
    %4 = tpu.matmul %1, %3, %cst {dimension_numbers = #tpu.dot_dimension_numbers<[1], [0], [0], [1], [0, 0, 1, 1], [], []>} : vector<32x32xbf16>, vector<32x32xbf16>, vector<32x32xf32> -> vector<32x32xf32>
    %c0_5 = arith.constant 0 : index
    %c0_6 = arith.constant 0 : index
    %5 = vector.load %arg7[%c0_5, %c0_6] : memref<1x32xf32, #tpu.memory_space<vmem>>, vector<1x32xf32>
    %6 = vector.broadcast %5 : vector<1x32xf32> to vector<32x32xf32>
    %7 = arith.addf %4, %6 : vector<32x32xf32>
    %c0_7 = arith.constant 0 : index
    %c0_8 = arith.constant 0 : index
    %c0_9 = arith.constant 0 : index
    %8 = vector.load %arg2[%c0_7, %c0_8, %c0_9] : memref<3x32x32xbf16, #tpu.memory_space<vmem>>, vector<1x32x32xbf16>
    %9 = vector.shape_cast %8 : vector<1x32x32xbf16> to vector<32x32xbf16>
    %c1 = arith.constant 1 : index
    %c0_10 = arith.constant 0 : index
    %c0_11 = arith.constant 0 : index
    %10 = vector.load %arg2[%c1, %c0_10, %c0_11] : memref<3x32x32xbf16, #tpu.memory_space<vmem>>, vector<1x32x32xbf16>
    %11 = vector.shape_cast %10 : vector<1x32x32xbf16> to vector<32x32xbf16>
    %c2 = arith.constant 2 : index
    %c0_12 = arith.constant 0 : index
    %c0_13 = arith.constant 0 : index
    %12 = vector.load %arg2[%c2, %c0_12, %c0_13] : memref<3x32x32xbf16, #tpu.memory_space<vmem>>, vector<1x32x32xbf16>
    %13 = vector.shape_cast %12 : vector<1x32x32xbf16> to vector<32x32xbf16>
    %14 = tpu.concatenate %9, %11, %13 in 0 : vector<32x32xbf16>, vector<32x32xbf16>, vector<32x32xbf16> -> vector<96x32xbf16>
    %c0_14 = arith.constant 0 : index
    %c0_15 = arith.constant 0 : index
    %15 = vector.load %arg5[%c0_14, %c0_15] : memref<32x32xbf16, #tpu.memory_space<vmem>>, vector<32x32xbf16>
    %cst_16 = arith.constant dense<0.000000e+00> : vector<96x32xf32>
    %16 = tpu.matmul %14, %15, %cst_16 {dimension_numbers = #tpu.dot_dimension_numbers<[1], [0], [0], [1], [0, 0, 1, 1], [], []>} : vector<96x32xbf16>, vector<32x32xbf16>, vector<96x32xf32> -> vector<96x32xf32>
    %cst_17 = arith.constant 0.000000e+00 : f32
    %17 = vector.broadcast %cst_17 : f32 to vector<32x32xf32>
    %cst_18 = arith.constant 0.000000e+00 : f32
    %18 = vector.broadcast %cst_18 : f32 to vector<32x32xf32>
    %cst_19 = arith.constant -1.000000e+30 : f32
    %19 = vector.broadcast %cst_19 : f32 to vector<32x32xf32>
    %cst_20 = arith.constant 1.000000e+30 : f32
    %20 = vector.broadcast %cst_20 : f32 to vector<32x32xf32>
    %21 = vector.extract_strided_slice %16 {offsets = [0, 0], sizes = [32, 32], strides = [1, 1]} : vector<96x32xf32> to vector<32x32xf32>
    %cst_21 = arith.constant 0.000000e+00 : f32
    %22 = vector.broadcast %cst_21 : f32 to vector<32x1xf32>
    %23 = arith.cmpf ogt, %2, %22 : vector<32x1xf32>
    %24 = arith.extui %23 : vector<32x1xi1> to vector<32x1xi32>
    %25 = arith.sitofp %24 : vector<32x1xi32> to vector<32x1xf32>
    %26 = vector.broadcast %25 : vector<32x1xf32> to vector<32x32xf32>
    %27 = arith.mulf %21, %26 : vector<32x32xf32>
    %28 = arith.addf %17, %27 : vector<32x32xf32>
    %29 = arith.mulf %21, %21 : vector<32x32xf32>
    %30 = vector.broadcast %25 : vector<32x1xf32> to vector<32x32xf32>
    %31 = arith.mulf %29, %30 : vector<32x32xf32>
    %32 = arith.addf %18, %31 : vector<32x32xf32>
    %cst_22 = arith.constant -1.000000e+30 : f32
    %33 = vector.shape_cast %23 : vector<32x1xi1> to vector<32x1xi1>
    %34 = vector.broadcast %33 : vector<32x1xi1> to vector<32x32xi1>
    %35 = vector.broadcast %cst_22 : f32 to vector<32x32xf32>
    %36 = arith.select %34, %21, %35 : vector<32x32xi1>, vector<32x32xf32>
    %37 = arith.maximumf %19, %36 : vector<32x32xf32>
    %cst_23 = arith.constant 1.000000e+30 : f32
    %38 = vector.shape_cast %23 : vector<32x1xi1> to vector<32x1xi1>
    %39 = vector.broadcast %38 : vector<32x1xi1> to vector<32x32xi1>
    %40 = vector.broadcast %cst_23 : f32 to vector<32x32xf32>
    %41 = arith.select %39, %21, %40 : vector<32x32xi1>, vector<32x32xf32>
    %42 = arith.minimumf %20, %41 : vector<32x32xf32>
    %43 = vector.extract_strided_slice %16 {offsets = [32, 0], sizes = [32, 32], strides = [1, 1]} : vector<96x32xf32> to vector<32x32xf32>
    %cst_24 = arith.constant 1.000000e+00 : f32
    %44 = vector.broadcast %cst_24 : f32 to vector<32x1xf32>
    %45 = arith.cmpf ogt, %2, %44 : vector<32x1xf32>
    %46 = arith.extui %45 : vector<32x1xi1> to vector<32x1xi32>
    %47 = arith.sitofp %46 : vector<32x1xi32> to vector<32x1xf32>
    %48 = vector.broadcast %47 : vector<32x1xf32> to vector<32x32xf32>
    %49 = arith.mulf %43, %48 : vector<32x32xf32>
    %50 = arith.addf %28, %49 : vector<32x32xf32>
    %51 = arith.mulf %43, %43 : vector<32x32xf32>
    %52 = vector.broadcast %47 : vector<32x1xf32> to vector<32x32xf32>
    %53 = arith.mulf %51, %52 : vector<32x32xf32>
    %54 = arith.addf %32, %53 : vector<32x32xf32>
    %cst_25 = arith.constant -1.000000e+30 : f32
    %55 = vector.shape_cast %45 : vector<32x1xi1> to vector<32x1xi1>
    %56 = vector.broadcast %55 : vector<32x1xi1> to vector<32x32xi1>
    %57 = vector.broadcast %cst_25 : f32 to vector<32x32xf32>
    %58 = arith.select %56, %43, %57 : vector<32x32xi1>, vector<32x32xf32>
    %59 = arith.maximumf %37, %58 : vector<32x32xf32>
    %cst_26 = arith.constant 1.000000e+30 : f32
    %60 = vector.shape_cast %45 : vector<32x1xi1> to vector<32x1xi1>
    %61 = vector.broadcast %60 : vector<32x1xi1> to vector<32x32xi1>
    %62 = vector.broadcast %cst_26 : f32 to vector<32x32xf32>
    %63 = arith.select %61, %43, %62 : vector<32x32xi1>, vector<32x32xf32>
    %64 = arith.minimumf %42, %63 : vector<32x32xf32>
    %65 = vector.extract_strided_slice %16 {offsets = [64, 0], sizes = [32, 32], strides = [1, 1]} : vector<96x32xf32> to vector<32x32xf32>
    %cst_27 = arith.constant 2.000000e+00 : f32
    %66 = vector.broadcast %cst_27 : f32 to vector<32x1xf32>
    %67 = arith.cmpf ogt, %2, %66 : vector<32x1xf32>
    %68 = arith.extui %67 : vector<32x1xi1> to vector<32x1xi32>
    %69 = arith.sitofp %68 : vector<32x1xi32> to vector<32x1xf32>
    %70 = vector.broadcast %69 : vector<32x1xf32> to vector<32x32xf32>
    %71 = arith.mulf %65, %70 : vector<32x32xf32>
    %72 = arith.addf %50, %71 : vector<32x32xf32>
    %73 = arith.mulf %65, %65 : vector<32x32xf32>
    %74 = vector.broadcast %69 : vector<32x1xf32> to vector<32x32xf32>
    %75 = arith.mulf %73, %74 : vector<32x32xf32>
    %76 = arith.addf %54, %75 : vector<32x32xf32>
    %cst_28 = arith.constant -1.000000e+30 : f32
    %77 = vector.shape_cast %67 : vector<32x1xi1> to vector<32x1xi1>
    %78 = vector.broadcast %77 : vector<32x1xi1> to vector<32x32xi1>
    %79 = vector.broadcast %cst_28 : f32 to vector<32x32xf32>
    %80 = arith.select %78, %65, %79 : vector<32x32xi1>, vector<32x32xf32>
    %81 = arith.maximumf %59, %80 : vector<32x32xf32>
    %cst_29 = arith.constant 1.000000e+30 : f32
    %82 = vector.shape_cast %67 : vector<32x1xi1> to vector<32x1xi1>
    %83 = vector.broadcast %82 : vector<32x1xi1> to vector<32x32xi1>
    %84 = vector.broadcast %cst_29 : f32 to vector<32x32xf32>
    %85 = arith.select %83, %65, %84 : vector<32x32xi1>, vector<32x32xf32>
    %86 = arith.minimumf %64, %85 : vector<32x32xf32>
    %cst_30 = arith.constant 1.000000e+00 : f32
    %87 = vector.broadcast %cst_30 : f32 to vector<32x1xf32>
    %88 = arith.maximumf %2, %87 : vector<32x1xf32>
    %89 = tpu.reciprocal %88 {approx = true} : vector<32x1xf32> -> vector<32x1xf32>
    %90 = vector.broadcast %89 : vector<32x1xf32> to vector<32x32xf32>
    %91 = arith.mulf %72, %90 : vector<32x32xf32>
    %92 = vector.broadcast %89 : vector<32x1xf32> to vector<32x32xf32>
    %93 = arith.mulf %76, %92 : vector<32x32xf32>
    %94 = arith.mulf %91, %91 : vector<32x32xf32>
    %95 = arith.subf %93, %94 : vector<32x32xf32>
    %cst_31 = arith.constant 0.000000e+00 : f32
    %96 = vector.broadcast %cst_31 : f32 to vector<32x32xf32>
    %97 = arith.maximumf %95, %96 : vector<32x32xf32>
    %cst_32 = arith.constant 0.000000e+00 : f32
    %98 = vector.broadcast %cst_32 : f32 to vector<32x1xf32>
    %99 = arith.cmpf ogt, %2, %98 : vector<32x1xf32>
    %cst_33 = arith.constant 9.99999974E-6 : f32
    %100 = vector.broadcast %cst_33 : f32 to vector<32x32xf32>
    %101 = arith.addf %97, %100 : vector<32x32xf32>
    %102 = math.sqrt %101 : vector<32x32xf32>
    %cst_34 = arith.constant 0.000000e+00 : f32
    %103 = vector.shape_cast %99 : vector<32x1xi1> to vector<32x1xi1>
    %104 = vector.broadcast %103 : vector<32x1xi1> to vector<32x32xi1>
    %105 = vector.broadcast %cst_34 : f32 to vector<32x32xf32>
    %106 = arith.select %104, %102, %105 : vector<32x32xi1>, vector<32x32xf32>
    %107 = arith.addf %91, %7 : vector<32x32xf32>
    %cst_35 = arith.constant 0.000000e+00 : f32
    %108 = vector.shape_cast %99 : vector<32x1xi1> to vector<32x1xi1>
    %109 = vector.broadcast %108 : vector<32x1xi1> to vector<32x32xi1>
    %110 = vector.broadcast %cst_35 : f32 to vector<32x32xf32>
    %111 = arith.select %109, %107, %110 : vector<32x32xi1>, vector<32x32xf32>
    %112 = arith.addf %81, %7 : vector<32x32xf32>
    %cst_36 = arith.constant 0.000000e+00 : f32
    %113 = vector.shape_cast %99 : vector<32x1xi1> to vector<32x1xi1>
    %114 = vector.broadcast %113 : vector<32x1xi1> to vector<32x32xi1>
    %115 = vector.broadcast %cst_36 : f32 to vector<32x32xf32>
    %116 = arith.select %114, %112, %115 : vector<32x32xi1>, vector<32x32xf32>
    %117 = arith.addf %86, %7 : vector<32x32xf32>
    %cst_37 = arith.constant 0.000000e+00 : f32
    %118 = vector.shape_cast %99 : vector<32x1xi1> to vector<32x1xi1>
    %119 = vector.broadcast %118 : vector<32x1xi1> to vector<32x32xi1>
    %120 = vector.broadcast %cst_37 : f32 to vector<32x32xf32>
    %121 = arith.select %119, %117, %120 : vector<32x32xi1>, vector<32x32xf32>
    %122 = tpu.concatenate %111, %116, %121, %106 in 1 : vector<32x32xf32>, vector<32x32xf32>, vector<32x32xf32>, vector<32x32xf32> -> vector<32x128xf32>
    %cst_38 = arith.constant 1.000000e+00 : f32
    %123 = vector.broadcast %cst_38 : f32 to vector<32x1xf32>
    %124 = arith.addf %2, %123 : vector<32x1xf32>
    %125 = math.log %124 : vector<32x1xf32>
    %cst_39 = arith.constant 0.889682888 : f32
    %126 = vector.broadcast %cst_39 : f32 to vector<32x1xf32>
    %127 = arith.mulf %125, %126 : vector<32x1xf32>
    %cst_40 = arith.constant 9.99999974E-6 : f32
    %128 = vector.broadcast %cst_40 : f32 to vector<32x1xf32>
    %129 = arith.maximumf %125, %128 : vector<32x1xf32>
    %130 = tpu.reciprocal %129 {approx = true} : vector<32x1xf32> -> vector<32x1xf32>
    %cst_41 = arith.constant 1.12399602 : f32
    %131 = vector.broadcast %cst_41 : f32 to vector<32x1xf32>
    %132 = arith.mulf %131, %130 : vector<32x1xf32>
    %133 = vector.broadcast %127 : vector<32x1xf32> to vector<32x128xf32>
    %134 = arith.mulf %122, %133 : vector<32x128xf32>
    %135 = vector.broadcast %132 : vector<32x1xf32> to vector<32x128xf32>
    %136 = arith.mulf %122, %135 : vector<32x128xf32>
    %137 = tpu.concatenate %122, %134, %136 in 1 : vector<32x128xf32>, vector<32x128xf32>, vector<32x128xf32> -> vector<32x384xf32>
    %138 = arith.truncf %137 : vector<32x384xf32> to vector<32x384xbf16>
    %c0_42 = arith.constant 0 : index
    %c0_43 = arith.constant 0 : index
    %139 = vector.load %arg8[%c0_42, %c0_43] : memref<32x32xbf16, #tpu.memory_space<vmem>>, vector<32x32xbf16>
    %cst_44 = arith.constant dense<0.000000e+00> : vector<32x32xf32>
    %140 = tpu.matmul %1, %139, %cst_44 {dimension_numbers = #tpu.dot_dimension_numbers<[1], [0], [0], [1], [0, 0, 1, 1], [], []>} : vector<32x32xbf16>, vector<32x32xbf16>, vector<32x32xf32> -> vector<32x32xf32>
    %c0_45 = arith.constant 0 : index
    %c0_46 = arith.constant 0 : index
    %141 = vector.load %arg9[%c0_45, %c0_46] : memref<384x32xbf16, #tpu.memory_space<vmem>>, vector<384x32xbf16>
    %cst_47 = arith.constant dense<0.000000e+00> : vector<32x32xf32>
    %142 = tpu.matmul %138, %141, %cst_47 {dimension_numbers = #tpu.dot_dimension_numbers<[1], [0], [0], [1], [0, 0, 1, 1], [], []>} : vector<32x384xbf16>, vector<384x32xbf16>, vector<32x32xf32> -> vector<32x32xf32>
    %143 = arith.addf %140, %142 : vector<32x32xf32>
    %c0_48 = arith.constant 0 : index
    %c0_49 = arith.constant 0 : index
    %144 = vector.load %arg10[%c0_48, %c0_49] : memref<1x32xf32, #tpu.memory_space<vmem>>, vector<1x32xf32>
    %145 = vector.broadcast %144 : vector<1x32xf32> to vector<32x32xf32>
    %146 = arith.addf %143, %145 : vector<32x32xf32>
    %c0_50 = arith.constant 0 : index
    %c0_51 = arith.constant 0 : index
    %147 = vector.load %arg4[%c0_50, %c0_51] : memref<32x1xf32, #tpu.memory_space<vmem>>, vector<32x1xf32>
    %148 = vector.broadcast %147 : vector<32x1xf32> to vector<32x32xf32>
    %149 = arith.mulf %146, %148 : vector<32x32xf32>
    %c0_52 = arith.constant 0 : index
    %c0_53 = arith.constant 0 : index
    %150 = vector.load %arg11[%c0_52, %c0_53] : memref<1x32xf32, #tpu.memory_space<vmem>>, vector<1x32xf32>
    %151 = vector.broadcast %150 : vector<1x32xf32> to vector<32x32xf32>
    %152 = arith.mulf %149, %151 : vector<32x32xf32>
    %c0_54 = arith.constant 0 : index
    %c0_55 = arith.constant 0 : index
    %153 = vector.load %arg12[%c0_54, %c0_55] : memref<1x32xf32, #tpu.memory_space<vmem>>, vector<1x32xf32>
    %154 = vector.broadcast %153 : vector<1x32xf32> to vector<32x32xf32>
    %155 = arith.addf %152, %154 : vector<32x32xf32>
    %cst_56 = arith.constant 0.000000e+00 : f32
    %156 = vector.broadcast %cst_56 : f32 to vector<32x32xf32>
    %157 = arith.maximumf %155, %156 : vector<32x32xf32>
    %158 = arith.addf %0, %157 : vector<32x32xf32>
    %c0_57 = arith.constant 0 : index
    %c0_58 = arith.constant 0 : index
    %159 = vector.load %arg13[%c0_57, %c0_58] : memref<32x32xf32, #tpu.memory_space<vmem>>, vector<32x32xf32>
    tpu.vector_store %arg13[%c0_57, %c0_58], %158 {strides = array<i32>} : memref<32x32xf32, #tpu.memory_space<vmem>>, vector<32x32xf32>,
    return
  }
  func.func @transform_0(%arg0: i32) -> (i32, i32) {
    %c0_i32 = arith.constant 0 : i32
    %c0_i32_0 = arith.constant 0 : i32
    return %arg0, %c0_i32 : i32, i32
  }
  func.func @transform_1(%arg0: i32) -> (i32, i32, i32) {
    %c0_i32 = arith.constant 0 : i32
    %c0_i32_0 = arith.constant 0 : i32
    %c0_i32_1 = arith.constant 0 : i32
    return %c0_i32, %arg0, %c0_i32_0 : i32, i32, i32
  }
  func.func @transform_2(%arg0: i32) -> (i32, i32) {
    %c0_i32 = arith.constant 0 : i32
    %c0_i32_0 = arith.constant 0 : i32
    return %arg0, %c0_i32 : i32, i32
  }
  func.func @transform_3(%arg0: i32) -> (i32, i32) {
    %c0_i32 = arith.constant 0 : i32
    %c0_i32_0 = arith.constant 0 : i32
    return %arg0, %c0_i32 : i32, i32
  }
  func.func @transform_4(%arg0: i32) -> (i32, i32) {
    %c0_i32 = arith.constant 0 : i32
    %c0_i32_0 = arith.constant 0 : i32
    %c0_i32_1 = arith.constant 0 : i32
    return %c0_i32, %c0_i32_0 : i32, i32
  }
  func.func @transform_5(%arg0: i32) -> (i32, i32) {
    %c0_i32 = arith.constant 0 : i32
    %c0_i32_0 = arith.constant 0 : i32
    %c0_i32_1 = arith.constant 0 : i32
    return %c0_i32, %c0_i32_0 : i32, i32
  }
  func.func @transform_6(%arg0: i32) -> (i32, i32) {
    %c0_i32 = arith.constant 0 : i32
    %c0_i32_0 = arith.constant 0 : i32
    %c0_i32_1 = arith.constant 0 : i32
    return %c0_i32, %c0_i32_0 : i32, i32
  }
  func.func @transform_7(%arg0: i32) -> (i32, i32) {
    %c0_i32 = arith.constant 0 : i32
    %c0_i32_0 = arith.constant 0 : i32
    %c0_i32_1 = arith.constant 0 : i32
    return %c0_i32, %c0_i32_0 : i32, i32
  }
  func.func @transform_8(%arg0: i32) -> (i32, i32) {
    %c0_i32 = arith.constant 0 : i32
    %c0_i32_0 = arith.constant 0 : i32
    %c0_i32_1 = arith.constant 0 : i32
    return %c0_i32, %c0_i32_0 : i32, i32
  }
  func.func @transform_9(%arg0: i32) -> (i32, i32) {
    %c0_i32 = arith.constant 0 : i32
    %c0_i32_0 = arith.constant 0 : i32
    %c0_i32_1 = arith.constant 0 : i32
    return %c0_i32, %c0_i32_0 : i32, i32
  }
  func.func @transform_10(%arg0: i32) -> (i32, i32) {
    %c0_i32 = arith.constant 0 : i32
    %c0_i32_0 = arith.constant 0 : i32
    %c0_i32_1 = arith.constant 0 : i32
    return %c0_i32, %c0_i32_0 : i32, i32
  }
  func.func @transform_11(%arg0: i32) -> (i32, i32) {
    %c0_i32 = arith.constant 0 : i32
    %c0_i32_0 = arith.constant 0 : i32
    %c0_i32_1 = arith.constant 0 : i32
    return %c0_i32, %c0_i32_0 : i32, i32
  }
  func.func @transform_12(%arg0: i32) -> (i32, i32) {
    %c0_i32 = arith.constant 0 : i32
    %c0_i32_0 = arith.constant 0 : i32
    return %arg0, %c0_i32 : i32, i32
  }
}

module attributes {stable_mosaic.version = 11 : i64} {
  func.func @_readout_mlp_kernel(%arg0: i32, %arg1: memref<3x64xf32, #tpu.memory_space<vmem>>, %arg2: memref<64x32xf32, #tpu.memory_space<vmem>>, %arg3: memref<32x16xf32, #tpu.memory_space<vmem>>, %arg4: memref<1x16xf32, #tpu.memory_space<vmem>>, %arg5: memref<16x8xf32, #tpu.memory_space<vmem>>, %arg6: memref<1x8xf32, #tpu.memory_space<vmem>>, %arg7: memref<8x2xf32, #tpu.memory_space<vmem>>, %arg8: memref<1x2xf32, #tpu.memory_space<vmem>>, %arg9: memref<3x2xf32, #tpu.memory_space<vmem>>) attributes {dimension_semantics = [#tpu.dimension_semantics<arbitrary>], iteration_bounds = array<i64: 1>, scalar_prefetch = 0 : i64, scratch_operands = 0 : i64, tpu.core_type = #tpu.core_type<tc>, window_params = [{pipeline_mode = #tpu.pipeline_mode<synchronous>, transform_indices = @transform_0, window_bounds = array<i64: 3, 64>}, {pipeline_mode = #tpu.pipeline_mode<synchronous>, transform_indices = @transform_1, window_bounds = array<i64: 64, 32>}, {pipeline_mode = #tpu.pipeline_mode<synchronous>, transform_indices = @transform_2, window_bounds = array<i64: 32, 16>}, {pipeline_mode = #tpu.pipeline_mode<synchronous>, transform_indices = @transform_3, window_bounds = array<i64: 1, 16>}, {pipeline_mode = #tpu.pipeline_mode<synchronous>, transform_indices = @transform_4, window_bounds = array<i64: 16, 8>}, {pipeline_mode = #tpu.pipeline_mode<synchronous>, transform_indices = @transform_5, window_bounds = array<i64: 1, 8>}, {pipeline_mode = #tpu.pipeline_mode<synchronous>, transform_indices = @transform_6, window_bounds = array<i64: 8, 2>}, {pipeline_mode = #tpu.pipeline_mode<synchronous>, transform_indices = @transform_7, window_bounds = array<i64: 1, 2>}, {pipeline_mode = #tpu.pipeline_mode<synchronous>, transform_indices = @transform_8, window_bounds = array<i64: 3, 2>}]} {
    %c0 = arith.constant 0 : index
    %c0_0 = arith.constant 0 : index
    %0 = vector.load %arg1[%c0, %c0_0] : memref<3x64xf32, #tpu.memory_space<vmem>>, vector<3x64xf32>
    %c0_1 = arith.constant 0 : index
    %c0_2 = arith.constant 0 : index
    %1 = vector.load %arg2[%c0_1, %c0_2] : memref<64x32xf32, #tpu.memory_space<vmem>>, vector<64x32xf32>
    %cst = arith.constant dense<0.000000e+00> : vector<3x32xf32>
    %2 = tpu.matmul %0, %1, %cst {dimension_numbers = #tpu.dot_dimension_numbers<[1], [0], [0], [1], [0, 0, 1, 1], [], []>} : vector<3x64xf32>, vector<64x32xf32>, vector<3x32xf32> -> vector<3x32xf32>
    %c0_3 = arith.constant 0 : index
    %c0_4 = arith.constant 0 : index
    %3 = vector.load %arg3[%c0_3, %c0_4] : memref<32x16xf32, #tpu.memory_space<vmem>>, vector<32x16xf32>
    %cst_5 = arith.constant dense<0.000000e+00> : vector<3x16xf32>
    %4 = tpu.matmul %2, %3, %cst_5 {dimension_numbers = #tpu.dot_dimension_numbers<[1], [0], [0], [1], [0, 0, 1, 1], [], []>} : vector<3x32xf32>, vector<32x16xf32>, vector<3x16xf32> -> vector<3x16xf32>
    %c0_6 = arith.constant 0 : index
    %c0_7 = arith.constant 0 : index
    %5 = vector.load %arg4[%c0_6, %c0_7] : memref<1x16xf32, #tpu.memory_space<vmem>>, vector<1x16xf32>
    %6 = vector.broadcast %5 : vector<1x16xf32> to vector<3x16xf32>
    %7 = arith.addf %4, %6 : vector<3x16xf32>
    %cst_8 = arith.constant 0.000000e+00 : f32
    %8 = vector.broadcast %cst_8 : f32 to vector<3x16xf32>
    %9 = arith.maximumf %7, %8 : vector<3x16xf32>
    %c0_9 = arith.constant 0 : index
    %c0_10 = arith.constant 0 : index
    %10 = vector.load %arg5[%c0_9, %c0_10] : memref<16x8xf32, #tpu.memory_space<vmem>>, vector<16x8xf32>
    %cst_11 = arith.constant dense<0.000000e+00> : vector<3x8xf32>
    %11 = tpu.matmul %9, %10, %cst_11 {dimension_numbers = #tpu.dot_dimension_numbers<[1], [0], [0], [1], [0, 0, 1, 1], [], []>} : vector<3x16xf32>, vector<16x8xf32>, vector<3x8xf32> -> vector<3x8xf32>
    %c0_12 = arith.constant 0 : index
    %c0_13 = arith.constant 0 : index
    %12 = vector.load %arg6[%c0_12, %c0_13] : memref<1x8xf32, #tpu.memory_space<vmem>>, vector<1x8xf32>
    %13 = vector.broadcast %12 : vector<1x8xf32> to vector<3x8xf32>
    %14 = arith.addf %11, %13 : vector<3x8xf32>
    %cst_14 = arith.constant 0.000000e+00 : f32
    %15 = vector.broadcast %cst_14 : f32 to vector<3x8xf32>
    %16 = arith.maximumf %14, %15 : vector<3x8xf32>
    %c0_15 = arith.constant 0 : index
    %c0_16 = arith.constant 0 : index
    %17 = vector.load %arg7[%c0_15, %c0_16] : memref<8x2xf32, #tpu.memory_space<vmem>>, vector<8x2xf32>
    %cst_17 = arith.constant dense<0.000000e+00> : vector<3x2xf32>
    %18 = tpu.matmul %16, %17, %cst_17 {dimension_numbers = #tpu.dot_dimension_numbers<[1], [0], [0], [1], [0, 0, 1, 1], [], []>} : vector<3x8xf32>, vector<8x2xf32>, vector<3x2xf32> -> vector<3x2xf32>
    %c0_18 = arith.constant 0 : index
    %c0_19 = arith.constant 0 : index
    %19 = vector.load %arg8[%c0_18, %c0_19] : memref<1x2xf32, #tpu.memory_space<vmem>>, vector<1x2xf32>
    %20 = vector.broadcast %19 : vector<1x2xf32> to vector<3x2xf32>
    %21 = arith.addf %18, %20 : vector<3x2xf32>
    %c0_20 = arith.constant 0 : index
    %c0_21 = arith.constant 0 : index
    %22 = vector.load %arg9[%c0_20, %c0_21] : memref<3x2xf32, #tpu.memory_space<vmem>>, vector<3x2xf32>
    tpu.vector_store %arg9[%c0_20, %c0_21], %21 {strides = array<i32>} : memref<3x2xf32, #tpu.memory_space<vmem>>, vector<3x2xf32>,
    return
  }
  func.func @transform_0(%arg0: i32) -> (i32, i32) {
    %c0_i32 = arith.constant 0 : i32
    %c0_i32_0 = arith.constant 0 : i32
    %c0_i32_1 = arith.constant 0 : i32
    return %c0_i32, %c0_i32_0 : i32, i32
  }
  func.func @transform_1(%arg0: i32) -> (i32, i32) {
    %c0_i32 = arith.constant 0 : i32
    %c0_i32_0 = arith.constant 0 : i32
    %c0_i32_1 = arith.constant 0 : i32
    return %c0_i32, %c0_i32_0 : i32, i32
  }
  func.func @transform_2(%arg0: i32) -> (i32, i32) {
    %c0_i32 = arith.constant 0 : i32
    %c0_i32_0 = arith.constant 0 : i32
    %c0_i32_1 = arith.constant 0 : i32
    return %c0_i32, %c0_i32_0 : i32, i32
  }
  func.func @transform_3(%arg0: i32) -> (i32, i32) {
    %c0_i32 = arith.constant 0 : i32
    %c0_i32_0 = arith.constant 0 : i32
    %c0_i32_1 = arith.constant 0 : i32
    return %c0_i32, %c0_i32_0 : i32, i32
  }
  func.func @transform_4(%arg0: i32) -> (i32, i32) {
    %c0_i32 = arith.constant 0 : i32
    %c0_i32_0 = arith.constant 0 : i32
    %c0_i32_1 = arith.constant 0 : i32
    return %c0_i32, %c0_i32_0 : i32, i32
  }
  func.func @transform_5(%arg0: i32) -> (i32, i32) {
    %c0_i32 = arith.constant 0 : i32
    %c0_i32_0 = arith.constant 0 : i32
    %c0_i32_1 = arith.constant 0 : i32
    return %c0_i32, %c0_i32_0 : i32, i32
  }
  func.func @transform_6(%arg0: i32) -> (i32, i32) {
    %c0_i32 = arith.constant 0 : i32
    %c0_i32_0 = arith.constant 0 : i32
    %c0_i32_1 = arith.constant 0 : i32
    return %c0_i32, %c0_i32_0 : i32, i32
  }
  func.func @transform_7(%arg0: i32) -> (i32, i32) {
    %c0_i32 = arith.constant 0 : i32
    %c0_i32_0 = arith.constant 0 : i32
    %c0_i32_1 = arith.constant 0 : i32
    return %c0_i32, %c0_i32_0 : i32, i32
  }
  func.func @transform_8(%arg0: i32) -> (i32, i32) {
    %c0_i32 = arith.constant 0 : i32
    %c0_i32_0 = arith.constant 0 : i32
    %c0_i32_1 = arith.constant 0 : i32
    return %c0_i32, %c0_i32_0 : i32, i32
  }
}

</mosaic_0001>

<bundles_post_ra>
// kernel: _lambda_.4
= control target key start
LH: loop header
LB: loop body
LE: loop exit
PB: predicated region body
PF: predicated region fallthrough
CT: control target
= control target key end

     0   :  { %s492_s15 = smov 0   ;;  %s518_s0 = inlined_call_operand.vmem [shape: f32[64,32], index: 0, kind: input, shape index: {}]   ;;  %s519_s1 = inlined_call_operand.vmem [shape: f32[64,8], index: 1, kind: input, shape index: {}]   ;;  %s520_s2 = inlined_call_operand.vmem [shape: f32[8,32], index: 2, kind: input, shape index: {}]   ;;  %s521_s3 = inlined_call_operand.vmem [shape: f32[1,32], index: 3, kind: input, shape index: {}]   ;;  %s522_s4 = inlined_call_operand.vmem [shape: f32[64,32], index: 4, kind: output, shape index: {}]  }
   0x1 LB: > { %s418_s16 = sadd.s32 4294967295, %s465_s15   ;;  %p422_p0 = scmp.ge.s32.totalorder %s465_s15, 1  ;;  %s465_s15 = sphi %s492_s15, %s14_s15  }
   0x2   : > { %p174_p1 = scmp.lt.s32.totalorder %s465_s15, 3 }
   0x4   : > { %p175_p2 = pnand %p422_p0, %p174_p1 }
   0x5   : > { %v231_v0 = vld [vmem:[%s520_s2] sm:$0xff] (!%p175_p2)  ;;  %s423_s19 = sshll.u32 (!%p175_p2), %s418_s16, 2  ;;  %vm232_vm0 = vcmask (!%p175_p2), 64512   ;;  %vm345_vm1 = vcmask (!%p175_p2), 261120  }
   0x6   : > { %178 = sbr.rel (%p175_p2) target bundleno = 236 (0xec), region = 36  ;;  %441 = vmatprep.subr.mxu0 (!%p175_p2), %v231_v0  ;;  %449 = vmatprep.subr.mxu1 (!%p175_p2), %v231_v0  ;;  %p206_p3 = scmp.lt.s32.totalorder (!%p175_p2), %s423_s19, 7  ;;  %v433_v12 = vld [vmem:[%s521_s3] ss:$0 sm:$0xff] (!%p175_p2) }
   0x7   : > { %442 = vmatpush3.msra.mxu0 (!%p175_p2), %v231_v0  ;;  %450 = vmatpush3.msra.mxu1 (!%p175_p2), %v231_v0 }
   0xd   : > { %s524_s19 = smov (!%p206_p3, %s423_s19), 7 }
   0xe   : > { %s424_s20 = sshll.u32 %s524_s19, 3 }
   0xf   : > { %s215_s23 = scalar_lea.vmem %s519_s1, %s424_s20  ;;  %s209_s26 = scalar_lea.vmem %s518_s0, %s424_s20 }
  0x10   : > { %v227_v1 = vld [vmem:[%s215_s23] sm:$0xff]  ;;  %v228_v2 = vld [vmem:[%s215_s23 + $0x8] sm:$0xff]  ;;  %v229_v3 = vld [vmem:[%s215_s23 + $0x10] sm:$0xff]  ;;  %s221_s5 = scalar_lea.vmem %s522_s4, %s424_s20 }
  0x11   : > { %443 = vmatprep.mubr.msk.f32.mxu0 %vm232_vm0, %v227_v1  ;;  %446 = vmatprep.mubr.msk.f32.mxu1 %vm232_vm0, %v229_v3  ;;  %v230_v4 = vld [vmem:[%s215_s23 + $0x18] sm:$0xff]  ;;  %v224_v5 = vld [vmem:[%s209_s26 + $0x8] sm:$0xff]  ;;  %v223_v7 = vld [vmem:[%s209_s26] sm:$0xff] }
  0x12   : > { %444 = vmatmul.mubr.msk.f32.vlgmr.msra.gmra.mrb[0].mxu0 %vm232_vm0, %v228_v2  ;;  %447 = vmatmul.mubr.msk.f32.vlgmr.msra.gmra.mrb[0].mxu1 %vm232_vm0, %v230_v4  ;;  %v226_v6 = vld [vmem:[%s209_s26 + $0x18] sm:$0xff]  ;;  %v225_v8 = vld [vmem:[%s209_s26 + $0x10] sm:$0xff] }
  0xe5   : > { %v445_v9 = vpop.f32.mrb[0].mxu0  ;;  %v448_v10 = vpop.f32.mrb[0].mxu1 }
  0xe6   : > { %v331_v11 = vadd.f32 %v445_v9, %v224_v5  ;;  %v311_v13 = vpop.f32.mrb[1].mxu0  ;;  %v333_v14 = vadd.f32 %v448_v10, %v226_v6  ;;  %v321_v15 = vpop.f32.mrb[1].mxu1 }
  0xe7   : > { %v330_v16 = vadd.f32 %v311_v13, %v223_v7  ;;  %v332_v17 = vadd.f32 %v321_v15, %v225_v8 }
  0xe8   : > { %v342_v20 = vadd.f32 %v433_v12, %v331_v11  ;;  %v344_v21 = vadd.f32 %v433_v12, %v333_v14 }
  0xe9   : > { %v341_v18 = vadd.f32 %v433_v12, %v330_v16  ;;  %v343_v19 = vadd.f32 %v433_v12, %v332_v17 }
  0xea   : > { %347 = vst.msk [vmem:[%s221_s5 + $0x8] sm:$0xff] %vm345_vm1, %v342_v20  ;;  %349 = vst.msk [vmem:[%s221_s5 + $0x18] sm:$0xff] %vm345_vm1, %v344_v21 }
  0xeb   : > { %346 = vst.msk [vmem:[%s221_s5] sm:$0xff] %vm345_vm1, %v341_v18  ;;  %348 = vst.msk [vmem:[%s221_s5 + $0x10] sm:$0xff] %vm345_vm1, %v343_v19 }
  0xec PF: > { %s14_s15 = sadd.s32 1, %s465_s15  }
  0xed   : > { %p11_p4 = scmp.ge.s32.totalorder %s14_s15, 4  }
  0xef   :  { %13 = sbr.rel (!%p11_p4) target bundleno = 1 (0x1), region = 69 }

// kernel: _lambda_.7
= control target key start
LH: loop header
LB: loop body
LE: loop exit
PB: predicated region body
PF: predicated region fallthrough
CT: control target
= control target key end

     0   :  { %v462_v0 = vmov 0.0|0.0   ;;  %vm463_vm0 = vmmov 0   ;;  %v464_v4 = vmov 0.0   ;;  %vm38_vm1 = vcmask 523264   ;;  %s574_s1 = inlined_call_operand.vmem [shape: f32[64,32], index: 1, kind: input, shape index: {}]   ;;  %s575_s2 = inlined_call_operand.vmem [shape: f32[32,16], index: 2, kind: input, shape index: {}]   ;;  %s576_s0 = inlined_call_operand.vmem [shape: f32[3,64], index: 0, kind: input, shape index: {}]   ;;  %s577_s4 = inlined_call_operand.vmem [shape: f32[16,8], index: 4, kind: input, shape index: {}]   ;;  %s578_s3 = inlined_call_operand.vmem [shape: f32[1,16], index: 3, kind: input, shape index: {}]   ;;  %s579_s6 = inlined_call_operand.vmem [shape: f32[8,2], index: 6, kind: input, shape index: {}]   ;;  %s580_s5 = inlined_call_operand.vmem [shape: f32[1,8], index: 5, kind: input, shape index: {}]   ;;  %s581_s7 = inlined_call_operand.vmem [shape: f32[1,2], index: 7, kind: input, shape index: {}]   ;;  %s582_s8 = inlined_call_operand.vmem [shape: f32[3,2], index: 8, kind: output, shape index: {}]  }
   0x1   :  { %438 = vmatprep.subr.bf16.mxu0 %v462_v0  ;;  %v30_v1 = vld [vmem:[%s574_s1] sm:$0xff]  ;;  %v31_v2 = vld [vmem:[%s574_s1 + $0x8] sm:$0xff]  ;;  %v32_v3 = vld [vmem:[%s574_s1 + $0x10] sm:$0xff]  ;;  %412 = vmatprep.mubr.msk.f32.mxu0 %vm463_vm0, %v464_v4  ;;  %vm123_vm2 = vcmask 261120   ;;  %vm207_vm3 = vcmask 130048   ;;  %vm290_vm4 = vcmask 64512  }
   0x2   :  { %v439_v5 = vpack.c.bf16 %v31_v2, %v30_v1  ;;  %v33_v6 = vld [vmem:[%s574_s1 + $0x18] sm:$0xff]  ;;  %450 = vmatprep.subr.bf16.mxu1 %v462_v0  ;;  %423 = vmatprep.mubr.msk.f32.mxu1 %vm463_vm0, %v464_v4  ;;  %v112_v8 = vld [vmem:[%s575_s2] sm:$0xff]  ;;  %v113_v9 = vld [vmem:[%s575_s2 + $0x8] sm:$0xff]  ;;  %vm364_vm5 = vcmask 10240  }
   0x3   :  { %v442_v7 = vpack.c.bf16 %v33_v6, %v32_v3  ;;  %v114_v10 = vld [vmem:[%s575_s2 + $0x10] sm:$0xff]  ;;  %v34_v11 = vld [vmem:[%s574_s1 + $0x20] sm:$0xff]  ;;  %v35_v12 = vld [vmem:[%s574_s1 + $0x28] sm:$0xff]  ;;  %v451_v13 = vpack.c.bf16 %v113_v9, %v112_v8 }
   0x4   :  { %440 = vmatpush3.bf16.msra.mxu0 %v439_v5  ;;  %v115_v14 = vld [vmem:[%s575_s2 + $0x18] sm:$0xff]  ;;  %v445_v16 = vpack.c.bf16 %v35_v12, %v34_v11  ;;  %v36_v17 = vld [vmem:[%s574_s1 + $0x30] sm:$0xff]  ;;  %v29_v20 = vld [vmem:[%s576_s0] sm:$0x7] }
   0x5   :  { %441 = vmatprep.subr.bf16.mxu0 %v462_v0  ;;  %452 = vmatpush3.bf16.msra.mxu1 %v451_v13  ;;  %v454_v15 = vpack.c.bf16 %v115_v14, %v114_v10  ;;  %v37_v18 = vld [vmem:[%s574_s1 + $0x38] sm:$0xff]  ;;  %v198_v23 = vld [vmem:[%s577_s4] sm:$0xff]  ;;  %v199_v24 = vld [vmem:[%s577_s4 + $0x8] sm:$0xff] }
   0x6   :  { %453 = vmatprep.subr.bf16.mxu1 %v462_v0  ;;  %v448_v19 = vpack.c.bf16 %v37_v18, %v36_v17  ;;  %v457_v25 = vpack.c.bf16 %v199_v24, %v198_v23  ;;  %v371_v26 = vld [vmem:[%s578_s3] ss:$0 sm:$0xff] }
   0x7   :  { %v282_v31 = vld [vmem:[%s579_s6] sm:$0xff] }
   0x8   :  { %443 = vmatpush3.bf16.msra.mxu0 %v442_v7  ;;  %v373_v32 = vld [vmem:[%s580_s5] ss:$0 sm:$0xff] }
   0x9   :  { %444 = vmatprep.subr.bf16.mxu0 %v462_v0  ;;  %455 = vmatpush3.bf16.msra.mxu1 %v454_v15  ;;  %v375_v37 = vld [vmem:[%s581_s7] ss:$0 sm:$0xff] }
   0xa   :  { %456 = vmatprep.subr.bf16.mxu1 %v462_v0 }
   0xc   :  { %446 = vmatpush3.bf16.msra.mxu0 %v445_v16 }
   0xd   :  { %447 = vmatprep.subr.bf16.mxu0 %v462_v0 }
  0x10   :  { %449 = vmatpush3.bf16.msra.mxu0 %v448_v19 }
  0x13   :  { %413 = vmatmul.mubr.msk.f32.vlgmr.msra.gmra.mrb[0].mxu0 %vm38_vm1, %v29_v20 }
  0xe6   :  { %v108_v21 = vpop.f32.mrb[0].mxu0 }
  0xe7   :  { %v414_v22 = vpop.f32.mrb[1].mxu0  ;;  %424 = vmatmul.mubr.msk.f32.vlgmr.msra.gmra.mrb[0].mxu1 %vm123_vm2, %v108_v21 }
  0xe8   :  { %430 = vmatprep.mubr.msk.f32.mxu1 %vm463_vm0, %v464_v4  ;;  %458 = vmatpush3.bf16.msra.mxu1 %v457_v25 }
  0xe9   :  { %433 = vmatprep.subr.mxu1 %v464_v4 }
 0x1ba   :  { %v193_v27 = vpop.f32.mrb[0].mxu1 }
 0x1bb   :  { %v194_v28 = vadd.f32 %v371_v26, %v193_v27  ;;  %v425_v29 = vpop.f32.mrb[1].mxu1 }
 0x1bd   :  { %v197_v30 = vmax.f32 %v194_v28, 0.0 }
 0x1bf   :  { %431 = vmatmul.mubr.msk.f32.vlgmr.msra.gmra.mrb[2].mxu1 %vm207_vm3, %v197_v30 }
 0x1c0   :  { %435 = vmatprep.mubr.msk.f32.mxu1 %vm463_vm0, %v464_v4  ;;  %434 = vmatpush3.msra.mxu1 %v282_v31 }
 0x292   :  { %v277_v33 = vpop.f32.mrb[2].mxu1 }
 0x293   :  { %v278_v34 = vadd.f32 %v373_v32, %v277_v33  ;;  %v432_v35 = vpop.f32.mrb[3].mxu1 }
 0x295   :  { %v281_v36 = vmax.f32 %v278_v34, 0.0 }
 0x297   :  { %436 = vmatmul.mubr.msk.f32.vlgmr.msra.gmra.mrb[4].mxu1 %vm290_vm4, %v281_v36 }
 0x36a   :  { %v360_v38 = vpop.f32.mrb[4].mxu1 }
 0x36b   :  { %v361_v39 = vadd.f32 %v375_v37, %v360_v38  ;;  %v437_v40 = vpop.f32.mrb[5].mxu1 }
 0x36d   :  { %365 = vst.msk [vmem:[%s582_s8] sm:$0x7] %vm364_vm5, %v361_v39 }

// kernel: _lambda_.5
= control target key start
LH: loop header
LB: loop body
LE: loop exit
PB: predicated region body
PF: predicated region fallthrough
CT: control target
= control target key end

     0   :  { %s2278_s21 = smov 0   ;;  %s2280_s22 = smov 0   ;;  %s2916_s0 = inlined_call_operand.vmem [shape: f32[64,32], index: 0, kind: input, shape index: {}]   ;;  %s2917_s1 = inlined_call_operand.vmem [shape: bf16[3,64,32], index: 1, kind: input, shape index: {}]   ;;  %s2918_s2 = inlined_call_operand.vmem [shape: f32[64,1], index: 2, kind: input, shape index: {}]   ;;  %s2919_s3 = inlined_call_operand.vmem [shape: f32[64,1], index: 3, kind: input, shape index: {}]   ;;  %s2920_s4 = inlined_call_operand.vmem [shape: bf16[32,32], index: 4, kind: input, shape index: {}]   ;;  %s2921_s5 = inlined_call_operand.vmem [shape: bf16[32,32], index: 5, kind: input, shape index: {}]   ;;  %s2922_s6 = inlined_call_operand.vmem [shape: f32[1,32], index: 6, kind: input, shape index: {}]   ;;  %s2923_s7 = inlined_call_operand.vmem [shape: bf16[32,32], index: 7, kind: input, shape index: {}]   ;;  %s2924_s8 = inlined_call_operand.vmem [shape: bf16[384,32], index: 8, kind: input, shape index: {}]   ;;  %s2925_s9 = inlined_call_operand.vmem [shape: f32[1,32], index: 9, kind: input, shape index: {}]   ;;  %s2926_s10 = inlined_call_operand.vmem [shape: f32[1,32], index: 10, kind: input, shape index: {}]   ;;  %s2927_s11 = inlined_call_operand.vmem [shape: f32[1,32], index: 11, kind: input, shape index: {}]   ;;  %s2928_s12 = inlined_call_operand.vmem [shape: f32[64,32], index: 12, kind: output, shape index: {}]  }
   0x1   :  { %s2282_s23 = smov 0  }
   0x2 LB: > { %s1847_s24 = sadd.s32 4294967295, %s2206_s23   ;;  %s2295_s25 = sadd.s32 1, %s2206_s23   ;;  %s2206_s23 = sphi %s2282_s23, %s2937_s23   ;;  %s2202_s22 = sphi %s2280_s22, %s2936_s22   ;;  %s2198_s21 = sphi %s2278_s21, %s2935_s21  }
   0x3   : > { %s52_s26 = ssub.s32 %s2206_s23, %s2295_s25  ;;  %s55_s27 = sadd.s32 1, %s2202_s22 }
   0x4   : > { %p53_p0 = scmp.eq.s32.totalorder %s52_s26, 0  ;;  %p62_p1 = scmp.ne.s32.totalorder %s2202_s22, %s2198_s21 }
   0x5   : > { %p63_p2 = scmp.eq.s32.totalorder %s2206_s23, 0  ;;  %p1850_p4 = scmp.ge.s32.totalorder %s2206_s23, 2 }
   0x6   : > { %s2304_s28 = scalar_select %p53_p0, %s2202_s22, %s55_s27  }
   0x7   : > { %p64_p3 = por %p63_p2, %p62_p1  ;;  %358 = sbr.rel (%p1850_p4) target bundleno = 21 (0x15), region = 48 }
   0xe   : > { %370 = sbr.rel (!%p64_p3) target bundleno = 21 (0x15), region = 56  ;;  %s372_s29 = sand.u32 (%p64_p3), 1, %s2202_s22  }
   0xf   : > { %s1934_s30 = sshll.u32 (%p64_p3), %s2206_s23, 4  ;;  %s2049_s13 = smul.u32 (%p64_p3), 48, %s372_s29 }
  0x10   : > { %s377_s16 = scalar_lea.vmem (%p64_p3), %s2917_s1, %s1934_s30 }
  0x11   : > { %v393_v0 = vld [vmem:[%s377_s16] sm:$0xff] (%p64_p3)   ;;  %v397_v1 = vld [vmem:[%s377_s16 + $0x8] sm:$0xff] (%p64_p3)   ;;  %s374_s17 = scalar_lea.vmem (%p64_p3), [#allocation2], %s2049_s13 }
  0x12   : > { %v401_v2 = vld [vmem:[%s377_s16 + $0x20] sm:$0xff] (%p64_p3)   ;;  %v405_v3 = vld [vmem:[%s377_s16 + $0x28] sm:$0xff] (%p64_p3)   ;;  %394 = vst [vmem:[%s374_s17] sm:$0xff] (%p64_p3), %v393_v0   ;;  %398 = vst [vmem:[%s374_s17 + $0x8] sm:$0xff] (%p64_p3), %v397_v1  }
  0x13   : > { %v409_v4 = vld [vmem:[%s377_s16 + $0x40] sm:$0xff] (%p64_p3)   ;;  %v413_v5 = vld [vmem:[%s377_s16 + $0x48] sm:$0xff] (%p64_p3)   ;;  %402 = vst [vmem:[%s374_s17 + $0x10] sm:$0xff] (%p64_p3), %v401_v2   ;;  %406 = vst [vmem:[%s374_s17 + $0x18] sm:$0xff] (%p64_p3), %v405_v3  }
  0x14   : > { %410 = vst [vmem:[%s374_s17 + $0x20] sm:$0xff] (%p64_p3), %v409_v4   ;;  %414 = vst [vmem:[%s374_s17 + $0x28] sm:$0xff] (%p64_p3), %v413_v5  }
  0x15 PF: > { %p1853_p5 = scmp.ge.s32.totalorder %s2206_s23, 1  ;;  %p480_p6 = scmp.lt.s32.totalorder %s2206_s23, 3 }
  0x17   : > { %p481_p7 = pnand %p1853_p5, %p480_p6 }
  0x18   : > { %v2112_v6 = vld [vmem:[%s2920_s4] sm:$0xff] (!%p481_p7)   ;;  %s487_s20 = sand.u32 (!%p481_p7), 1, %s2198_s21   ;;  %v2113_v7 = vld [vmem:[%s2920_s4 + $0x8] sm:$0xff] (!%p481_p7)   ;;  %vm602_vm0 = vcmask (!%p481_p7), 261120   ;;  %s1854_s21 = sshll.u32 (!%p481_p7), %s1847_s24, 2  ;;  %v2208_v13 = vmov (!%p481_p7), 0  }
  0x19   : > { %484 = sbr.rel (%p481_p7) target bundleno = 676 (0x2a4), region = 105  ;;  %1997 = vmatprep.subr.bf16.mxu1 (!%p481_p7), %v2112_v6  ;;  %v2118_v8 = vld [vmem:[%s2921_s5] sm:$0xff] (!%p481_p7)   ;;  %v2119_v9 = vld [vmem:[%s2921_s5 + $0x8] sm:$0xff] (!%p481_p7)   ;;  %p544_p8 = scmp.lt.s32.totalorder (!%p481_p7), %s1854_s21, 7  ;;  %2091 = vset.pattern.permute.xlu1 (!%p481_p7), %v2208_v13  ;;  %v2209_v26 = vmov (!%p481_p7), 0.0  }
  0x1a   : > { %s2050_s29 = smul.u32 (!%p481_p7), 48, %s487_s20  ;;  %1998 = vmatpush3.bf16.msra.mxu1 (!%p481_p7), %v2112_v6  ;;  %1989 = vmatprep.subr.bf16.mxu0 (!%p481_p7), %v2118_v8  ;;  %s2210_s24 = smov (!%p481_p7), 32  }
  0x1b   : > { %1999 = vmatprep.subr.bf16.mxu1 (!%p481_p7), %v2113_v7  ;;  %1990 = vmatpush3.bf16.msra.mxu0 (!%p481_p7), %v2118_v8  ;;  %s2211_s15 = smov (!%p481_p7), 64  }
  0x1c   : > { %s2327_s16 = scalar_lea.vmem (!%p481_p7), [#allocation2], %s2050_s29  ;;  %1991 = vmatprep.subr.bf16.mxu0 (!%p481_p7), %v2119_v9  ;;  %2080 = vset.pattern.permute.xlu0 (!%p481_p7), %v2208_v13  ;;  %s2212_s29 = smov (!%p481_p7), 96  }
  0x1d   : > { %v2114_v10 = vld [vmem:[%s2327_s16] sm:$0xff] (!%p481_p7)   ;;  %v2115_v11 = vld [vmem:[%s2327_s16 + $0x8] sm:$0xff] (!%p481_p7)   ;;  %v2116_v12 = vld [vmem:[%s2327_s16 + $0x10] sm:$0xff] (!%p481_p7)  }
  0x1e   : > { %2001 = vmatprep.mubr.msk.bf16.mxu1 (!%p481_p7), %vm602_vm0, %v2114_v10  ;;  %2000 = vmatpush3.bf16.msra.mxu1 (!%p481_p7), %v2113_v7  ;;  %v2117_v21 = vld [vmem:[%s2327_s16 + $0x18] sm:$0xff] (!%p481_p7)   ;;  %v2120_v25 = vld [vmem:[%s2327_s16 + $0x20] sm:$0xff] (!%p481_p7)   ;;  %v2121_v46 = vld [vmem:[%s2327_s16 + $0x28] sm:$0xff] (!%p481_p7)  }
  0x1f   : > { %1992 = vmatpush3.bf16.msra.mxu0 (!%p481_p7), %v2119_v9 }
  0x20   : > { %s2939_s21 = smov (!%p544_p8, %s1854_s21), 7 }
  0x21   : > { %s2337_s17 = sshll.u32 %s2939_s21, 3  ;;  %2002 = vmatmul.mubr.msk.bf16.vlgmr.msra.gmra.mrb[0].mxu1 %vm602_vm0, %v2115_v11 }
  0x22   : > { %s2344_s18 = scalar_lea.vmem %s2916_s0, %s2337_s17  ;;  %2005 = vmatprep.mubr.msk.bf16.mxu1 %vm602_vm0, %v2116_v12  ;;  %s554_s26 = scalar_lea.vmem %s2918_s2, %s2337_s17 }
  0x23   : > { %v569_v14 = vld [vmem:[%s2344_s18] sm:$0xff]  ;;  %v570_v15 = vld [vmem:[%s2344_s18 + $0x8] sm:$0xff]  ;;  %v571_v16 = vld [vmem:[%s2344_s18 + $0x10] sm:$0xff]  ;;  %s560_s16 = scalar_lea.vmem %s2919_s3, %s2337_s17 }
  0x24   : > { %v2354_v17 = vpack.c.bf16 %v570_v15, %v569_v14  ;;  %v572_v18 = vld [vmem:[%s2344_s18 + $0x18] sm:$0xff]  ;;  %v2357_v19 = vld [vmem:[%s554_s26 + $0x10] sm:$0xff]  ;;  %v2366_v23 = vld [vmem:[%s554_s26] sm:$0xff] }
  0x25   : > { %v2359_v20 = vld [vmem:[%s554_s26 + $0x18] sm:$0xff]  ;;  %v2362_v22 = vpack.c.bf16 %v572_v18, %v571_v16  ;;  %vm819_vm1 = vcmp.gt.f32.partialorder %v2357_v19, 0.0  ;;  %v2368_v24 = vld [vmem:[%s554_s26 + $0x8] sm:$0xff]  ;;  %vm817_vm3 = vcmp.gt.f32.partialorder %v2366_v23, 0.0  ;;  %v1071_v31 = vmax.f32 %v2357_v19, 1.0 }
  0x26   : > { %vm820_vm2 = vcmp.gt.f32.partialorder %v2359_v20, 0.0  ;;  %1993 = vmatprep.mubr.msk.bf16.mxu0 %vm602_vm0, %v2354_v17  ;;  %v1891_v27 = vsel %vm819_vm1, 1.0, %v2209_v26  ;;  %vm818_vm4 = vcmp.gt.f32.partialorder %v2368_v24, 0.0  ;;  %v1889_v30 = vsel %vm817_vm3, 1.0, %v2209_v26 }
  0x27   : > { %v1892_v28 = vsel %vm820_vm2, 1.0, %v2209_v26  ;;  %1994 = vmatmul.mubr.msk.bf16.vlgmr.msra.gmra.mrb[0].mxu0 %vm602_vm0, %v2362_v22  ;;  %v1072_v32 = vmax.f32 %v2359_v20, 1.0  ;;  %v1890_v33 = vsel %vm818_vm4, 1.0, %v2209_v26  ;;  %v1070_v34 = vmax.f32 %v2368_v24, 1.0 }
  0x28   : > { %v2092_v29 = vpack.i.bf16 %v1892_v28, %v1891_v27  ;;  %v2081_v35 = vpack.i.bf16 %v1890_v33, %v1889_v30  ;;  %vm903_vm5 = vcmp.gt.f32.partialorder %v2357_v19, 1.0  ;;  %vm904_vm6 = vcmp.gt.f32.partialorder %v2359_v20, 1.0 }
  0x29   : > { %vm901_vm7 = vcmp.gt.f32.partialorder %v2366_v23, 1.0  ;;  %2006 = vmatmul.mubr.msk.bf16.gmra.mrb[4].mxu1 %vm602_vm0, %v2117_v21  ;;  %v1069_v36 = vmax.f32 %v2366_v23, 1.0  ;;  %v1895_v37 = vsel %vm903_vm5, 1.0, %v2209_v26  ;;  %v1896_v38 = vsel %vm904_vm6, 1.0, %v2209_v26 }
  0x2a   : > { %2093 = vperm.xlu1 %2091, %v2092_v29   ;;  %vm902_vm8 = vcmp.gt.f32.partialorder %v2368_v24, 1.0  ;;  %2009 = vmatprep.mubr.msk.bf16.mxu1 %vm602_vm0, %v2120_v25  ;;  %2148 = vrcp.f32 %v1070_v34  ;;  %v2097_v39 = vpack.i.bf16 %v1896_v38, %v1895_v37  ;;  %v1893_v40 = vsel %vm901_vm7, 1.0, %v2209_v26 }
  0x2b   : > { %2082 = vperm.xlu0 %2080, %v2081_v35   ;;  %v1894_v41 = vsel %vm902_vm8, 1.0, %v2209_v26  ;;  %vm987_vm9 = vcmp.gt.f32.partialorder %v2357_v19, 2.0  ;;  %vm988_vm10 = vcmp.gt.f32.partialorder %v2359_v20, 2.0  ;;  %vm985_vm11 = vcmp.gt.f32.partialorder %v2366_v23, 2.0 }
  0x2c   : > { %v2086_v42 = vpack.i.bf16 %v1894_v41, %v1893_v40  ;;  %v1899_v43 = vsel %vm987_vm9, 1.0, %v2209_v26  ;;  %v1900_v44 = vsel %vm988_vm10, 1.0, %v2209_v26  ;;  %vm986_vm12 = vcmp.gt.f32.partialorder %v2368_v24, 2.0 }
  0x2d   : > { %v1897_v45 = vsel %vm985_vm11, 1.0, %v2209_v26  ;;  %2150 = vrcp.f32 %v1069_v36  ;;  %v2107_v47 = vpack.i.bf16 %v1900_v44, %v1899_v43  ;;  %v1898_v48 = vsel %vm986_vm12, 1.0, %v2209_v26 }
  0x2e   : > { %2098 = vperm.xlu1 %2091, %v2097_v39   ;;  %v2102_v49 = vpack.i.bf16 %v1898_v48, %v1897_v45  ;;  %2152 = vrcp.f32 %v1072_v32  ;;  %v822_v50 = vsel %vm818_vm4, 1, %v2208_v13  ;;  %v1240_v51 = vadd.f32 1.0, %v2368_v24 }
  0x2f   : > { %2087 = vperm.xlu0 %2080, %v2086_v42   ;;  %2154 = vrcp.f32 %v1071_v31  ;;  %v821_v52 = vsel %vm817_vm3, 1, %v2208_v13  ;;  %v1239_v53 = vadd.f32 1.0, %v2366_v23  ;;  %v1242_v54 = vadd.f32 1.0, %v2359_v20 }
  0x30   : > { %v1241_v55 = vadd.f32 1.0, %v2357_v19  ;;  %2156 = vlog2.f32 %v1240_v51  ;;  %v824_v62 = vsel %vm820_vm2, 1, %v2208_v13  ;;  %v823_v3 = vsel %vm819_vm1, 1, %v2208_v13 }
  0x31   : > { %2010 = vmatmul.mubr.msk.bf16.gmra.mrb[8].mxu1 %vm602_vm0, %v2121_v46  ;;  %2158 = vlog2.f32 %v1239_v53  ;;  %v906_v6 = vsel %vm902_vm8, 1, %v2208_v13  ;;  %v905_v9 = vsel %vm901_vm7, 1, %v2208_v13  ;;  %v908_v11 = vsel %vm904_vm6, 1, %v2208_v13 }
  0x32   : > { %2108 = vperm.xlu1 %2091, %v2107_v47   ;;  %2160 = vlog2.f32 %v1242_v54  ;;  %v907_v14 = vsel %vm903_vm5, 1, %v2208_v13  ;;  %v990_v15 = vsel %vm986_vm12, 1, %v2208_v13  ;;  %v989_v16 = vsel %vm985_vm11, 1, %v2208_v13 }
  0x33   : > { %2103 = vperm.xlu0 %2080, %v2102_v49   ;;  %2162 = vlog2.f32 %v1241_v55  ;;  %v992_v21 = vsel %vm988_vm10, 1, %v2208_v13  ;;  %v991_v26 = vsel %vm987_vm9, 1, %v2208_v13 }
  0x34   : > { %v2149_v56 = vpop.eup %2148 }
  0x36   : > { %873 = vperm.xlu1 %2091, %v822_v50  }
  0x37   : > { %870 = vperm.xlu0 %2080, %v821_v52   ;;  %v2151_v57 = vpop.eup %2150 }
  0x38   : > { %v2153_v58 = vpop.eup %2152 }
  0x39   : > { %v2155_v59 = vpop.eup %2154 }
  0x3a   : > { %1084 = vperm.xlu1 %2091, %v2149_v56   ;;  %v2157_v60 = vpop.eup %2156 }
  0x3b   : > { %1079 = vperm.xlu0 %2080, %v2151_v57   ;;  %v2159_v61 = vpop.eup %2158  ;;  %v1246_v63 = vmul.f32 0.6931472, %v2157_v60 }
  0x3c   : > { %v2161_v0 = vpop.eup %2160  ;;  %v1244_v1 = vmul.f32 0.6931472, %v2159_v61 }
  0x3d   : > { %v2163_v2 = vpop.eup %2162  ;;  %v1256_v4 = vmax.f32 %v1246_v63, 1e-05  ;;  %v2433_v5 = vmul.f32 0.6931472, %v2161_v0  ;;  %v1252_v31 = vmul.f32 0.8896829, %v1246_v63 }
  0x3e   : > { %1094 = vperm.xlu1 %2091, %v2153_v58   ;;  %v1255_v7 = vmax.f32 %v1244_v1, 1e-05  ;;  %v2438_v8 = vmul.f32 0.6931472, %v2163_v2  ;;  %v1251_v20 = vmul.f32 0.8896829, %v1244_v1 }
  0x3f   : > { %1089 = vperm.xlu0 %2080, %v2155_v59   ;;  %2164 = vrcp.f32 %v1256_v4  ;;  %v1258_v10 = vmax.f32 %v2433_v5, 1e-05 }
  0x40   : > { %2166 = vrcp.f32 %v1255_v7  ;;  %v1257_v12 = vmax.f32 %v2438_v8, 1e-05 }
  0x41   : > { %2168 = vrcp.f32 %v1258_v10 }
  0x42   : > { %879 = vperm.xlu1 %2091, %v824_v62   ;;  %2170 = vrcp.f32 %v1257_v12 }
  0x43   : > { %876 = vperm.xlu0 %2080, %v823_v3  }
  0x46   : > { %957 = vperm.xlu1 %2091, %v906_v6  }
  0x47   : > { %954 = vperm.xlu0 %2080, %v905_v9  }
  0x49   : > { %v2165_v18 = vpop.eup %2164 }
  0x4a   : > { %963 = vperm.xlu1 %2091, %v908_v11   ;;  %v2167_v25 = vpop.eup %2166  ;;  %v1264_v24 = vmul.f32 1.123996, %v2165_v18  ;;  %v2531_v18 = vld [vmem:[%s2922_s6] ss:$0 sm:$0xff] }
  0x4b   : > { %960 = vperm.xlu0 %2080, %v907_v14   ;;  %v2169_v27 = vpop.eup %2168  ;;  %v1263_v28 = vmul.f32 1.123996, %v2167_v25 }
  0x4c   : > { %v2171_v29 = vpop.eup %2170  ;;  %v1266_v23 = vmul.f32 1.123996, %v2169_v27 }
  0x4d   : > { %v1265_v30 = vmul.f32 1.123996, %v2171_v29 }
  0x4e   : > { %1041 = vperm.xlu1 %2091, %v990_v15  }
  0x4f   : > { %1038 = vperm.xlu0 %2080, %v989_v16  }
  0x52   : > { %1047 = vperm.xlu1 %2091, %v992_v21  }
  0x53   : > { %1044 = vperm.xlu0 %2080, %v991_v26  }
  0x56   : > { %1298 = vperm.xlu1 %2091, %v1264_v24  }
  0x57   : > { %1293 = vperm.xlu0 %2080, %v1263_v28  }
  0x5a   : > { %1308 = vperm.xlu1 %2091, %v1266_v23  }
  0x5b   : > { %1303 = vperm.xlu0 %2080, %v1265_v30  }
  0x5e   : > { %1274 = vperm.xlu1 %2091, %v1252_v31  }
  0x5f   : > { %1269 = vperm.xlu0 %2080, %v1251_v20  }
  0xa9   : > { %v2465_v19 = vpop.permute.xlu1 %2093 }
  0xaa   : > { %v2463_v32 = vpop.permute.xlu0 %2082  ;;  %v2096_v47 = vunpack.i.h.bf16 %v2465_v19  ;;  %v2095_v48 = vunpack.i.l.bf16 %v2465_v19 }
  0xab   : > { %v2085_v49 = vunpack.i.h.bf16 %v2463_v32  ;;  %v2084_v50 = vunpack.i.l.bf16 %v2463_v32 }
  0xad   : > { %v2469_v33 = vpop.permute.xlu1 %2098 }
  0xae   : > { %v2467_v13 = vpop.permute.xlu0 %2087  ;;  %v2101_v51 = vunpack.i.h.bf16 %v2469_v33  ;;  %v2100_v52 = vunpack.i.l.bf16 %v2469_v33 }
  0xaf   : > { %v2090_v53 = vunpack.i.h.bf16 %v2467_v13  ;;  %v2089_v54 = vunpack.i.l.bf16 %v2467_v13 }
  0xb1   : > { %v2473_v35 = vpop.permute.xlu1 %2108 }
  0xb2   : > { %v2471_v34 = vpop.permute.xlu0 %2103  ;;  %v2110_v56 = vunpack.i.l.bf16 %v2473_v35 }
  0xb5   : > { %v2477_v37 = vpop.permute.xlu1 %873 }
  0xb6   : > { %v2475_v36 = vpop.permute.xlu0 %870  ;;  %vm882_vm13 = vcmp.eq.s32.totalorder %v2477_v37, 1  ;;  %v1254_v37 = vmul.f32 0.8896829, %v2433_v5 }
  0xb7   : > { %vm881_vm14 = vcmp.eq.s32.totalorder %v2475_v36, 1 }
  0xb9   : > { %v2481_v39 = vpop.permute.xlu1 %1084 }
  0xba   : > { %v2479_v38 = vpop.permute.xlu0 %1079 }
  0xbd   : > { %v2485_v41 = vpop.permute.xlu1 %1094 }
  0xbe   : > { %v2483_v40 = vpop.permute.xlu0 %1089 }
  0xc1   : > { %v2489_v43 = vpop.permute.xlu1 %879 }
  0xc2   : > { %v2487_v42 = vpop.permute.xlu0 %876  ;;  %vm884_vm1 = vcmp.eq.s32.totalorder %v2489_v43, 1 }
  0xc3   : > { %vm883_vm15 = vcmp.eq.s32.totalorder %v2487_v42, 1 }
  0xc5   : > { %v2493_v45 = vpop.permute.xlu1 %957 }
  0xc6   : > { %v2491_v44 = vpop.permute.xlu0 %954  ;;  %vm966_vm5 = vcmp.eq.s32.totalorder %v2493_v45, 1 }
  0xc7   : > { %vm965_vm2 = vcmp.eq.s32.totalorder %v2491_v44, 1 }
  0xc9   : > { %v2512_v59 = vpop.permute.xlu1 %963 }
  0xca   : > { %v2495_v46 = vpop.permute.xlu0 %960  ;;  %vm968_vm4 = vcmp.eq.s32.totalorder %v2512_v59, 1 }
  0xcb   : > { %vm967_vm3 = vcmp.eq.s32.totalorder %v2495_v46, 1 }
  0xcd   : > { %v2537_v28 = vpop.permute.xlu1 %1041 }
  0xce   : > { %v2515_v61 = vpop.permute.xlu0 %1038  ;;  %vm1050_vm9 = vcmp.eq.s32.totalorder %v2537_v28, 1 }
  0xcf   : > { %vm1049_vm7 = vcmp.eq.s32.totalorder %v2515_v61, 1 }
  0xd2   : > { %v2542_v20 = vpop.permute.xlu0 %1044 }
  0xd3   : > { %vm1051_vm6 = vcmp.eq.s32.totalorder %v2542_v20, 1 }
  0xf4   : > { %v2003_v60 = vpop.f32.mrb[0].mxu1 }
  0xf5   : > { %v859_v62 = vmul.f32 %v2003_v60, %v2003_v60  ;;  %v887_v63 = vsel %vm883_vm15, %v2003_v60, -1e+30  ;;  %v895_v0 = vsel %vm883_vm15, %v2003_v60, 1e+30  ;;  %v770_v1 = vpop.f32.mrb[1].mxu1  ;;  %v851_v7 = vmul.f32 %v2095_v48, %v2003_v60 }
  0xf6   : > { %v891_v2 = vmax.f32 %v887_v63, -1e+30  ;;  %v899_v3 = vmin.f32 %v895_v0, 1e+30  ;;  %v857_v4 = vmul.f32 %v770_v1, %v770_v1  ;;  %v2004_v6 = vpop.f32.mrb[2].mxu1  ;;  %v849_v14 = vmul.f32 %v2084_v50, %v770_v1 }
  0xf7   : > { %v885_v9 = vsel %vm881_vm14, %v770_v1, -1e+30  ;;  %v893_v10 = vsel %vm881_vm14, %v770_v1, 1e+30  ;;  %v773_v11 = vpop.f32.mrb[3].mxu1  ;;  %v863_v12 = vmul.f32 %v2095_v48, %v859_v62  ;;  %v860_v16 = vmul.f32 %v2004_v6, %v2004_v6 }
  0xf8   : > { %v889_v15 = vmax.f32 %v885_v9, -1e+30  ;;  %v852_v21 = vmul.f32 %v2096_v47, %v2004_v6  ;;  %v888_v25 = vsel %vm884_vm1, %v2004_v6, -1e+30  ;;  %v896_v26 = vsel %vm884_vm1, %v2004_v6, 1e+30 }
  0xf9   : > { %v858_v24 = vmul.f32 %v773_v11, %v773_v11  ;;  %v861_v29 = vmul.f32 %v2084_v50, %v857_v4  ;;  %v897_v23 = vmin.f32 %v893_v10, 1e+30  ;;  %v892_v30 = vmax.f32 %v888_v25, -1e+30 }
  0xfa   : > { %v1995_v27 = vpop.f32.mrb[0].mxu0  ;;  %v886_v31 = vsel %vm882_vm13, %v773_v11, -1e+30  ;;  %v864_v32 = vmul.f32 %v2096_v47, %v860_v16  ;;  %v900_v19 = vmin.f32 %v896_v26, 1e+30  ;;  %v850_v48 = vmul.f32 %v2085_v49, %v773_v11 }
  0xfb   : > { %v894_v60 = vsel %vm882_vm13, %v773_v11, 1e+30  ;;  %v643_v62 = vpop.f32.mrb[1].mxu0  ;;  %v862_v63 = vmul.f32 %v2085_v49, %v858_v24  ;;  %v890_v0 = vmax.f32 %v886_v31, -1e+30  ;;  %v2547_v4 = vadd.f32 %v1995_v27, %v2531_v18 }
  0xfc   : > { %v898_v1 = vmin.f32 %v894_v60, 1e+30  ;;  %v2007_v50 = vpop.f32.mrb[4].mxu1  ;;  %v1996_v6 = vpop.f32.mrb[2].mxu0  ;;  %v2599_v59 = vadd.f32 %v2531_v18, %v643_v62 }
  0xfd   : > { %v935_v9 = vmul.f32 %v2100_v52, %v2007_v50  ;;  %v943_v47 = vmul.f32 %v2007_v50, %v2007_v50  ;;  %v971_v10 = vsel %vm967_vm3, %v2007_v50, -1e+30  ;;  %v979_v11 = vsel %vm967_vm3, %v2007_v50, 1e+30  ;;  %v786_v49 = vpop.f32.mrb[5].mxu1  ;;  %v2556_v16 = vpop.f32.mrb[3].mxu0 }
  0xfe   : > { %v2558_v25 = vmax.f32 %v891_v2, %v971_v10  ;;  %v2560_v26 = vmin.f32 %v899_v3, %v979_v11  ;;  %v933_v24 = vmul.f32 %v2089_v54, %v786_v49  ;;  %v941_v27 = vmul.f32 %v786_v49, %v786_v49  ;;  %v2008_v31 = vpop.f32.mrb[6].mxu1  ;;  %v2571_v3 = vpop.permute.xlu1 %1047 }
  0xff   : > { %v939_v60 = vadd.f32 %v935_v9, %v851_v7  ;;  %v947_v57 = vmul.f32 %v2100_v52, %v943_v47  ;;  %v969_v46 = vsel %vm965_vm2, %v786_v49, -1e+30  ;;  %v977_v2 = vsel %vm965_vm2, %v786_v49, 1e+30  ;;  %v789_v50 = vpop.f32.mrb[7].mxu1 }
 0x100   : > { %v937_v10 = vadd.f32 %v933_v24, %v849_v14  ;;  %v945_v11 = vmul.f32 %v2089_v54, %v941_v27  ;;  %v2575_v55 = vmax.f32 %v889_v15, %v969_v46  ;;  %v2577_v58 = vmin.f32 %v897_v23, %v977_v2 }
 0x101   : > { %vm1052_vm8 = vcmp.eq.s32.totalorder %v2571_v3, 1  ;;  %v951_v52 = vadd.f32 %v947_v57, %v863_v12  ;;  %v936_v7 = vmul.f32 %v2101_v51, %v2008_v31  ;;  %v944_v9 = vmul.f32 %v2008_v31, %v2008_v31 }
 0x102   : > { %v972_v44 = vsel %vm968_vm4, %v2008_v31, -1e+30  ;;  %v949_v47 = vadd.f32 %v945_v11, %v861_v29  ;;  %v980_v54 = vsel %vm968_vm4, %v2008_v31, 1e+30  ;;  %v934_v14 = vmul.f32 %v2090_v53, %v789_v50 }
 0x103   : > { %v2584_v49 = vmax.f32 %v892_v30, %v972_v44  ;;  %v940_v15 = vadd.f32 %v936_v7, %v852_v21  ;;  %v948_v57 = vmul.f32 %v2101_v51, %v944_v9  ;;  %v2592_v12 = vmin.f32 %v900_v19, %v980_v54 }
 0x104   : > { %v942_v23 = vmul.f32 %v789_v50, %v789_v50  ;;  %v938_v24 = vadd.f32 %v934_v14, %v850_v48  ;;  %v970_v27 = vsel %vm966_vm5, %v789_v50, -1e+30  ;;  %v978_v29 = vsel %vm966_vm5, %v789_v50, 1e+30  ;;  %v2011_v30 = vpop.f32.mrb[8].mxu1 }
 0x105   : > { %v952_v31 = vadd.f32 %v948_v57, %v864_v32  ;;  %v2603_v33 = vmax.f32 %v890_v0, %v970_v27  ;;  %v2605_v51 = vmin.f32 %v898_v1, %v978_v29  ;;  %v802_v19 = vpop.f32.mrb[9].mxu1  ;;  %v1019_v48 = vmul.f32 %v2110_v56, %v2011_v30 }
 0x106   : > { %v946_v21 = vmul.f32 %v2090_v53, %v942_v23  ;;  %v1027_v46 = vmul.f32 %v2011_v30, %v2011_v30  ;;  %v2611_v45 = vsel %vm1051_vm6, %v2011_v30, -1e+30  ;;  %v2012_v2 = vpop.f32.mrb[10].mxu1  ;;  %v2614_v62 = vadd.f32 %v1996_v6, %v2531_v18 }
 0x107   : > { %v2621_v53 = vsel %vm1051_vm6, %v2011_v30, 1e+30  ;;  %v2929_v32 = vunpack.i.l.bf16 %v2471_v34  ;;  %v1025_v1 = vmul.f32 %v802_v19, %v802_v19  ;;  %v805_v50 = vpop.f32.mrb[11].mxu1  ;;  %v1023_v11 = vadd.f32 %v1019_v48, %v939_v60 }
 0x108   : > { %v2617_v13 = vadd.f32 %v946_v21, %v862_v63  ;;  %v1031_v7 = vmul.f32 %v2110_v56, %v1027_v46  ;;  %v2629_v6 = vsel %vm1049_vm7, %v802_v19, -1e+30  ;;  %v2930_v63 = vunpack.i.h.bf16 %v2473_v35  ;;  %v2122_v56 = vld [vmem:[%s2924_s8 + $0x40] sm:$0xff]  }
 0x109   : > { %v1017_v0 = vmul.f32 %v2929_v32, %v802_v19  ;;  %v2931_v20 = vmov %v2929_v32  ;;  %v2637_v14 = vsel %vm1049_vm7, %v802_v19, 1e+30  ;;  %v1028_v57 = vmul.f32 %v2012_v2, %v2012_v2  ;;  %1947 = vmatprep.subr.bf16.mxu0 %v2122_v56 }
 0x10a   : > { %v1020_v9 = vmul.f32 %v2930_v63, %v2012_v2  ;;  %v1029_v54 = vmul.f32 %v2931_v20, %v1025_v1  ;;  %v1035_v60 = vadd.f32 %v1031_v7, %v951_v52  ;;  %v1099_v23 = vmul.f32 %v2483_v40, %v1023_v11  ;;  %v2124_v7 = vld [vmem:[%s2924_s8 + $0x80] sm:$0xff]  }
 0x10b   : > { %v1021_v44 = vadd.f32 %v1017_v0, %v937_v10  ;;  %v1056_v29 = vsel %vm1052_vm8, %v2012_v2, -1e+30  ;;  %v2123_v10 = vld [vmem:[%s2924_s8] sm:$0xff]   ;;  %v2932_v21 = vmov %v2930_v63  ;;  %v2933_v48 = vunpack.i.h.bf16 %v2471_v34  ;;  %2013 = vmatprep.subr.bf16.mxu1 %v2124_v7 }
 0x10c   : > { %v1024_v27 = vadd.f32 %v1020_v9, %v940_v15  ;;  %v1033_v30 = vadd.f32 %v1029_v54, %v949_v47  ;;  %v1032_v19 = vmul.f32 %v2932_v21, %v1028_v57  ;;  %v1103_v52 = vmul.f32 %v2483_v40, %v1035_v60  ;;  %1948 = vmatpush3.bf16.msra.mxu0 %v2123_v10  ;;  %v2125_v40 = vld [vmem:[%s2924_s8 + $0x48] sm:$0xff]  }
 0x10d   : > { %v1097_v61 = vmul.f32 %v2479_v38, %v1021_v44  ;;  %v1018_v46 = vmul.f32 %v2933_v48, %v805_v50  ;;  %v1107_v15 = vmul.f32 %v1099_v23, %v1099_v23  ;;  %v2655_v32 = vadd.f32 %v1099_v23, %v2547_v4  ;;  %1949 = vmatprep.subr.bf16.mxu0 %v2125_v40 }
 0x10e   : > { %v1100_v0 = vmul.f32 %v2485_v41, %v1024_v27  ;;  %v1101_v47 = vmul.f32 %v2479_v38, %v1033_v30  ;;  %v1036_v35 = vadd.f32 %v1032_v19, %v952_v31  ;;  %v2126_v38 = vld [vmem:[%s2924_s8 + $0x8] sm:$0xff]   ;;  %v1064_v31 = vsel %vm1052_vm8, %v2012_v2, 1e+30  ;;  %2014 = vmatpush3.bf16.msra.mxu1 %v2124_v7 }
 0x10f   : > { %v1105_v1 = vmul.f32 %v1097_v61, %v1097_v61  ;;  %v2660_v11 = vadd.f32 %v1097_v61, %v2599_v59  ;;  %v1111_v63 = vsub.f32 %v1103_v52, %v1107_v15  ;;  %v1022_v20 = vadd.f32 %v1018_v46, %v938_v24  ;;  %v2127_v61 = vld [vmem:[%s2924_s8 + $0x88] sm:$0xff]  }
 0x110   : > { %v1108_v9 = vmul.f32 %v1100_v0, %v1100_v0  ;;  %v2669_v44 = vadd.f32 %v1100_v0, %v2614_v62  ;;  %v1104_v57 = vmul.f32 %v2485_v41, %v1036_v35  ;;  %v1026_v56 = vmul.f32 %v805_v50, %v805_v50  ;;  %1950 = vmatpush3.bf16.msra.mxu0 %v2126_v38 }
 0x111   : > { %v1109_v54 = vsub.f32 %v1101_v47, %v1105_v1  ;;  %v1115_v60 = vmax.f32 %v1111_v63, 0.0  ;;  %v1054_v23 = vsel %vm1050_vm9, %v805_v50, -1e+30  ;;  %v647_v24 = vadd.f32 %v2531_v18, %v2556_v16  ;;  %v2128_v18 = vld [vmem:[%s2924_s8 + $0x50] sm:$0xff]   ;;  %2015 = vmatprep.subr.bf16.mxu1 %v2127_v61  ;;  %v2133_v1 = vld [vmem:[%s2924_s8 + $0x98] sm:$0xff]  }
 0x112   : > { %v1098_v27 = vmul.f32 %v2481_v39, %v1022_v20  ;;  %v1112_v30 = vsub.f32 %v1104_v57, %v1108_v9  ;;  %v2934_v3 = vmov %v2933_v48  ;;  %v1059_v41 = vmax.f32 %v2558_v25, %v2611_v45  ;;  %v2129_v25 = vld [vmem:[%s2924_s8 + $0x10] sm:$0xff]   ;;  %1951 = vmatprep.subr.bf16.mxu0 %v2128_v18  ;;  %2016 = vmatpush3.bf16.msra.mxu1 %v2127_v61  ;;  %v2143_v61 = vld [vmem:[%s2924_s8 + $0x78] sm:$0xff]  }
 0x113   : > { %v1113_v10 = vmax.f32 %v1109_v54, 0.0  ;;  %v1030_v2 = vmul.f32 %v2934_v3, %v1026_v56  ;;  %v1062_v16 = vsel %vm1050_vm9, %v805_v50, 1e+30  ;;  %v1060_v34 = vmax.f32 %v2584_v49, %v1056_v29  ;;  %v2138_v56 = vld [vmem:[%s2924_s8 + $0x28] sm:$0xff]  }
 0x114   : > { %v1106_v21 = vmul.f32 %v1098_v27, %v1098_v27  ;;  %v2694_v19 = vadd.f32 %v1098_v27, %v647_v24  ;;  %v1116_v48 = vmax.f32 %v1112_v30, 0.0  ;;  %v1163_v52 = vadd.f32 %v1059_v41, %v2547_v4  ;;  %1952 = vmatpush3.bf16.msra.mxu0 %v2129_v25  ;;  %v2139_v27 = vld [vmem:[%s2924_s8 + $0xa8] sm:$0xff]   ;;  %v2142_v41 = vld [vmem:[%s2924_s8 + $0xb0] sm:$0xff]   ;;  %v2144_v25 = vld [vmem:[%s2924_s8 + $0x38] sm:$0xff]  }
 0x115   : > { %v2700_v45 = vadd.f32 1e-05, %v1113_v10  ;;  %v1034_v46 = vadd.f32 %v1030_v2, %v2617_v13  ;;  %v1164_v28 = vadd.f32 %v1060_v34, %v2614_v62  ;;  %v1067_v50 = vmin.f32 %v2560_v26, %v2621_v53  ;;  %v2130_v26 = vld [vmem:[%s2924_s8 + $0x90] sm:$0xff]  }
 0x116   : > { %v1068_v49 = vmin.f32 %v2592_v12, %v1064_v31  ;;  %v1057_v29 = vmax.f32 %v2575_v55, %v2629_v6  ;;  %v2710_v15 = vadd.f32 1e-05, %v1115_v60  ;;  %v1167_v13 = vsel %vm883_vm15, %v1163_v52, 0.0  ;;  %v2131_v12 = vld [vmem:[%s2924_s8 + $0x58] sm:$0xff]   ;;  %2017 = vmatprep.subr.bf16.mxu1 %v2130_v26  ;;  %v2137_v31 = vld [vmem:[%s2924_s8 + $0x68] sm:$0xff]  }
 0x117   : > { %v1102_v0 = vmul.f32 %v2481_v39, %v1034_v46  ;;  %v1058_v47 = vmax.f32 %v2603_v33, %v1054_v23  ;;  %1185 = vrot.lane.b32.xlu0 %v1167_v13, %s2210_s24  ;;  %v1168_v39 = vsel %vm884_vm1, %v1164_v28, 0.0  ;;  %v1171_v55 = vadd.f32 %v1067_v50, %v2547_v4  ;;  %v2132_v6 = vld [vmem:[%s2924_s8 + $0x18] sm:$0xff]   ;;  %1953 = vmatprep.subr.bf16.mxu0 %v2131_v12 }
 0x118   : > { %v1172_v53 = vadd.f32 %v1068_v49, %v2614_v62  ;;  %v1161_v33 = vadd.f32 %v1057_v29, %v2599_v59  ;;  %1187 = vrot.lane.b32.xlu1 %v1168_v39, %s2210_s24  ;;  %v1065_v40 = vmin.f32 %v2577_v58, %v2637_v14  ;;  %v1066_v4 = vmin.f32 %v2605_v51, %v1062_v16  ;;  %v2134_v62 = vld [vmem:[%s2924_s8 + $0x60] sm:$0xff]   ;;  %v2145_v29 = vld [vmem:[%s2924_s8 + $0xb8] sm:$0xff]  }
 0x119   : > { %v1110_v35 = vsub.f32 %v1102_v0, %v1106_v21  ;;  %v1162_v7 = vadd.f32 %v1058_v47, %v647_v24  ;;  %v2741_v63 = vadd.f32 1e-05, %v1116_v48  ;;  %2172 = vrsqrt.f32 %v2700_v45  ;;  %2018 = vmatpush3.bf16.msra.mxu1 %v2130_v26  ;;  %1954 = vmatpush3.bf16.msra.mxu0 %v2132_v6  ;;  %v2135_v58 = vld [vmem:[%s2924_s8 + $0x20] sm:$0xff]  }
 0x11a   : > { %v1175_v20 = vsel %vm883_vm15, %v1171_v55, 0.0  ;;  %v1169_v38 = vadd.f32 %v1065_v40, %v2599_v59  ;;  %v1170_v54 = vadd.f32 %v1066_v4, %v647_v24  ;;  %v1176_v51 = vsel %vm884_vm1, %v1172_v53, 0.0  ;;  %2019 = vmatprep.subr.bf16.mxu1 %v2133_v1  ;;  %v2136_v59 = vld [vmem:[%s2924_s8 + $0xa0] sm:$0xff]   ;;  %1955 = vmatprep.subr.bf16.mxu0 %v2134_v62  ;;  %v1294_v40 = vpop.permute.xlu0 %1293  ;;  %v1299_v4 = vpop.permute.xlu1 %1298 }
 0x11b   : > { %v1114_v9 = vmax.f32 %v1110_v35, 0.0  ;;  %1201 = vrot.lane.b32.xlu0 %v1175_v20, %s2211_s15  ;;  %2174 = vrsqrt.f32 %v2710_v15  ;;  %v1165_v57 = vsel %vm881_vm14, %v1161_v33, 0.0  ;;  %v1166_v60 = vsel %vm882_vm13, %v1162_v7, 0.0  ;;  %v2844_v26 = vld [vmem:[%s2923_s7] sm:$0xff]   ;;  %v1688_v35 = vld [vmem:[%s560_s16 + $0x8] sm:$0xff]  ;;  %v1690_v7 = vld [vmem:[%s560_s16 + $0x18] sm:$0xff] }
 0x11c   : > { %1203 = vrot.lane.b32.xlu1 %v1176_v51, %s2211_s15  ;;  %2176 = vrsqrt.f32 %v2741_v63  ;;  %v2776_v23 = vsel %vm883_vm15, %v2655_v32, 0.0  ;;  %v2781_v24 = vsel %vm884_vm1, %v2669_v44, 0.0  ;;  %v2790_v10 = vsel %vm881_vm14, %v2660_v11, 0.0  ;;  %v2140_v44 = vld [vmem:[%s2924_s8 + $0x70] sm:$0xff]  }
 0x11d   : > { %v2757_v14 = vadd.f32 1e-05, %v1114_v9  ;;  %2020 = vmatpush3.bf16.msra.mxu1 %v2133_v1  ;;  %1956 = vmatpush3.bf16.msra.mxu0 %v2135_v58  ;;  %v2795_v32 = vsel %vm882_vm13, %v2694_v19, 0.0  ;;  %v1173_v30 = vsel %vm881_vm14, %v1169_v38, 0.0  ;;  %v2141_v11 = vld [vmem:[%s2924_s8 + $0x30] sm:$0xff]   ;;  %v1174_v2 = vsel %vm882_vm13, %v1170_v54, 0.0 }
 0x11e   : > { %2021 = vmatprep.subr.bf16.mxu1 %v2136_v59  ;;  %1957 = vmatprep.subr.bf16.mxu0 %v2137_v31  ;;  %vm1123_vm10 = vcmp.eq.f32.partialorder %v2700_v45, inf  ;;  %v1126_v21 = vand.u32 2147483648, %v2700_v45  ;;  %vm1125_vm11 = vcmp.eq.f32.partialorder %v2700_v45, 0.0  ;;  %vm1137_vm12 = vcmp.eq.f32.partialorder %v2710_v15, inf  ;;  %v1687_v1 = vld [vmem:[%s560_s16] sm:$0xff]  ;;  %v1304_v62 = vpop.permute.xlu0 %1303 }
 0x11f   : > { %2178 = vrsqrt.f32 %v2757_v14  ;;  %1181 = vrot.lane.b32.xlu0 %v1165_v57, %s2210_s24  ;;  %v1140_v52 = vand.u32 2147483648, %v2710_v15  ;;  %vm1139_vm2 = vcmp.eq.f32.partialorder %v2710_v15, 0.0  ;;  %vm1130_vm3 = vcmp.eq.f32.partialorder %v2757_v14, inf }
 0x120   : > { %1183 = vrot.lane.b32.xlu1 %v1166_v60, %s2210_s24  ;;  %v1133_v36 = vand.u32 2147483648, %v2757_v14  ;;  %vm1132_vm4 = vcmp.eq.f32.partialorder %v2757_v14, 0.0  ;;  %v1147_v55 = vand.u32 2147483648, %v2741_v63  ;;  %vm1146_vm5 = vcmp.eq.f32.partialorder %v2741_v63, 0.0  ;;  %s566_s24 = scalar_lea.vmem %s2928_s12, %s2337_s17 }
 0x121   : > { %2022 = vmatpush3.bf16.msra.mxu1 %v2136_v59  ;;  %1958 = vmatpush3.bf16.msra.mxu0 %v2138_v56  ;;  %v1253_v33 = vmul.f32 0.8896829, %v2438_v8  ;;  %v1689_v8 = vld [vmem:[%s560_s16 + $0x10] sm:$0xff] }
 0x122   : > { %2023 = vmatprep.subr.bf16.mxu1 %v2139_v27  ;;  %1959 = vmatprep.subr.bf16.mxu0 %v2140_v44  ;;  %v1270_v9 = vpop.permute.xlu0 %1269 }
 0x123   : > { %v2173_v3 = vpop.eup %2172  ;;  %1197 = vrot.lane.b32.xlu0 %v1173_v30, %s2211_s15 }
 0x124   : > { %1199 = vrot.lane.b32.xlu1 %v1174_v2, %s2211_s15  ;;  %v1122_v18 = vmul.f32 %v2173_v3, %v2700_v45 }
 0x125   : > { %v2175_v16 = vpop.eup %2174  ;;  %2024 = vmatpush3.bf16.msra.mxu1 %v2139_v27  ;;  %1960 = vmatpush3.bf16.msra.mxu0 %v2141_v11 }
 0x126   : > { %v1124_v19 = vsel %vm1123_vm10, %v2700_v45, %v1122_v18  ;;  %v1136_v34 = vmul.f32 %v2175_v16, %v2710_v15  ;;  %v2177_v48 = vpop.eup %2176  ;;  %2025 = vmatprep.subr.bf16.mxu1 %v2142_v41  ;;  %1961 = vmatprep.subr.bf16.mxu0 %v2143_v61 }
 0x127   : > { %v1127_v46 = vsel %vm1125_vm11, %v1126_v21, %v1124_v19  ;;  %v1143_v49 = vmul.f32 %v2177_v48, %v2741_v63 }
 0x128   : > { %v1149_v45 = vsel %vm881_vm14, %v1127_v46, 0.0  ;;  %v1138_v50 = vsel %vm1137_vm12, %v2710_v15, %v1136_v34  ;;  %vm1144_vm14 = vcmp.eq.f32.partialorder %v2741_v63, inf }
 0x129   : > { %v2179_v28 = vpop.eup %2178  ;;  %1213 = vrot.lane.b32.xlu0 %v1149_v45, %s2212_s29  ;;  %v1141_v13 = vsel %vm1139_vm2, %v1140_v52, %v1138_v50  ;;  %2026 = vmatpush3.bf16.msra.mxu1 %v2142_v41  ;;  %v1145_v47 = vsel %vm1144_vm14, %v2741_v63, %v1143_v49  ;;  %v1309_v63 = vpop.permute.xlu1 %1308 }
 0x12a   : > { %v1129_v0 = vmul.f32 %v2179_v28, %v2757_v14  ;;  %1962 = vmatpush3.bf16.msra.mxu0 %v2144_v25  ;;  %2027 = vmatprep.subr.bf16.mxu1 %v2145_v29  ;;  %v1151_v39 = vsel %vm883_vm15, %v1141_v13, 0.0  ;;  %v1148_v6 = vsel %vm1146_vm5, %v1147_v55, %v1145_v47  ;;  %vm1229_vm15 = vcmask 523264  }
 0x12b   : > { %v1152_v42 = vsel %vm884_vm1, %v1148_v6, 0.0 }
 0x12c   : > { %v1131_v15 = vsel %vm1130_vm3, %v2757_v14, %v1129_v0 }
 0x12d   : > { %v1134_v12 = vsel %vm1132_vm4, %v1133_v36, %v1131_v15  ;;  %1217 = vrot.lane.b32.xlu0 %v1151_v39, %s2212_s29  ;;  %2028 = vmatpush3.bf16.msra.mxu1 %v2145_v29  ;;  %v1275_v43 = vpop.permute.xlu1 %1274 }
 0x12e   : > { %v1150_v53 = vsel %vm882_vm13, %v1134_v12, 0.0  ;;  %2033 = vmatprep.subr.bf16.mxu1 %v2844_v26  ;;  %vm1234_vm13 = vcmask 785408  }
 0x12f   : > { %1215 = vrot.lane.b32.xlu1 %v1150_v53, %s2212_s29 }
 0x131   : > { %1279 = vperm.xlu0 %2080, %v1253_v33   ;;  %v1929_v33 = vld [vmem:[%s2925_s9] ss:$0 sm:$0xff] }
 0x133   : > { %1219 = vrot.lane.b32.xlu1 %v1152_v42, %s2212_s29 }
 0x135   : > { %1693 = vperm.xlu0 %2080, %v1687_v1  }
 0x137   : > { %1284 = vperm.xlu1 %2091, %v1254_v37  }
 0x139   : > { %1703 = vperm.xlu0 %2080, %v1689_v8  }
 0x13b   : > { %1698 = vperm.xlu1 %2091, %v1688_v35   ;;  %v1930_v35 = vld [vmem:[%s2926_s10] ss:$0 sm:$0xff] }
 0x13f   : > { %1708 = vperm.xlu1 %2091, %v1690_v7  }
 0x189   : > { %v1186_v20 = vpop.permute.xlu0 %1185 }
 0x18a   : > { %v1188_v38 = vpop.permute.xlu1 %1187  ;;  %v1227_v44 = vsel %vm602_vm0, %v2776_v23, %v1186_v20 }
 0x18b   : > { %v1228_v19 = vsel %vm602_vm0, %v2781_v24, %v1188_v38  ;;  %v2147_v24 = vld [vmem:[%s2923_s7 + $0x8] sm:$0xff]  }
 0x18d   : > { %v1202_v54 = vpop.permute.xlu0 %1201 }
 0x18e   : > { %v1204_v58 = vpop.permute.xlu1 %1203  ;;  %v1232_v2 = vsel %vm1229_vm15, %v1227_v44, %v1202_v54 }
 0x18f   : > { %v1233_v23 = vsel %vm1229_vm15, %v1228_v19, %v1204_v58 }
 0x191   : > { %v1182_v5 = vpop.permute.xlu0 %1181 }
 0x192   : > { %v1184_v51 = vpop.permute.xlu1 %1183  ;;  %v1225_v31 = vsel %vm602_vm0, %v2790_v10, %v1182_v5 }
 0x193   : > { %v1226_v27 = vsel %vm602_vm0, %v2795_v32, %v1184_v51 }
 0x195   : > { %v1198_v59 = vpop.permute.xlu0 %1197 }
 0x196   : > { %v1200_v57 = vpop.permute.xlu1 %1199  ;;  %v1230_v56 = vsel %vm1229_vm15, %v1225_v31, %v1198_v59 }
 0x197   : > { %v1231_v30 = vsel %vm1229_vm15, %v1226_v27, %v1200_v57 }
 0x19b   : > { %v1214_v14 = vpop.permute.xlu0 %1213 }
 0x19c   : > { %v1235_v60 = vsel %vm1234_vm13, %v1230_v56, %v1214_v14 }
 0x19d   : > { %v1287_v41 = vmul.f32 %v1270_v9, %v1235_v60  ;;  %v1311_v61 = vmul.f32 %v1294_v40, %v1235_v60  ;;  %v1931_v9 = vld [vmem:[%s2927_s11] ss:$0 sm:$0xff] }
 0x19f   : > { %v1218_v3 = vpop.permute.xlu0 %1217 }
 0x1a0   : > { %v1237_v32 = vsel %vm1234_vm13, %v1232_v2, %v1218_v3  ;;  %v2180_v3 = vld [vmem:[%s2344_s18] sm:$0xff] }
 0x1a1   : > { %v1216_v11 = vpop.permute.xlu1 %1215  ;;  %v1313_v52 = vmul.f32 %v1304_v62, %v1237_v32 }
 0x1a2   : > { %v1236_v10 = vsel %vm1234_vm13, %v1231_v30, %v1216_v11 }
 0x1a3   : > { %v1288_v18 = vmul.f32 %v1275_v43, %v1236_v10  ;;  %v1312_v16 = vmul.f32 %v1299_v4, %v1236_v10  ;;  %v1315_v21 = vpack.c.bf16 %v1236_v10, %v1235_v60 }
 0x1a5   : > { %v1220_v34 = vpop.permute.xlu1 %1219  ;;  %v1316_v25 = vpack.c.bf16 %v1288_v18, %v1287_v41  ;;  %v1317_v48 = vpack.c.bf16 %v1312_v16, %v1311_v61  ;;  %v2181_v18 = vld [vmem:[%s2344_s18 + $0x8] sm:$0xff] }
 0x1a6   : > { %v1238_v46 = vsel %vm1234_vm13, %v1233_v23, %v1220_v34  ;;  %v2182_v34 = vld [vmem:[%s2344_s18 + $0x10] sm:$0xff] }
 0x1a7   : > { %v1314_v28 = vmul.f32 %v1309_v63, %v1238_v46  ;;  %1549 = vmatprep.mubr.bf16.mxu0 %v1316_v25  ;;  %2029 = vmatprep.mubr.bf16.mxu1 %v1317_v48  ;;  %v1318_v45 = vpack.c.bf16 %v1238_v46, %v1237_v32 }
 0x1a8   : > { %1550 = vmatmul.mubr.bf16.vlgmr.msra.gmra.mrb[4].mxu0 %v1315_v21 }
 0x1a9   : > { %v1320_v50 = vpack.c.bf16 %v1314_v28, %v1313_v52 }
 0x1ab   : > { %2030 = vmatmul.mubr.bf16.vlgmr.msra.gmra.mrb[12].mxu1 %v1320_v50 }
 0x1ac   : > { %2034 = vmatpush3.bf16.msra.mxu1 %v2844_v26  ;;  %2037 = vmatprep.mubr.msk.bf16.mxu1 %vm602_vm0, %v2354_v17 }
 0x1ad   : > { %2035 = vmatprep.subr.bf16.mxu1 %v2147_v24 }
 0x1b0   : > { %2036 = vmatpush3.bf16.msra.mxu1 %v2147_v24  ;;  %v1280_v49 = vpop.permute.xlu0 %1279 }
 0x1b1   : > { %v1289_v0 = vmul.f32 %v1280_v49, %v1237_v32 }
 0x1b4   : > { %v1694_v8 = vpop.permute.xlu0 %1693 }
 0x1b6   : > { %v1285_v29 = vpop.permute.xlu1 %1284 }
 0x1b7   : > { %v1290_v13 = vmul.f32 %v1285_v29, %v1238_v46  ;;  %2038 = vmatmul.mubr.msk.bf16.vlgmr.msra.gmra.mrb[12].mxu1 %vm602_vm0, %v2362_v22  ;;  %v2183_v46 = vld [vmem:[%s2344_s18 + $0x18] sm:$0xff] }
 0x1b8   : > { %v1704_v56 = vpop.permute.xlu0 %1703 }
 0x1b9   : > { %v1319_v36 = vpack.c.bf16 %v1290_v13, %v1289_v0 }
 0x1ba   : > { %v1699_v63 = vpop.permute.xlu1 %1698 }
 0x1bb   : > { %1557 = vmatprep.mubr.bf16.mxu0 %v1319_v36 }
 0x1bc   : > { %1558 = vmatmul.mubr.bf16.gmra.mrb[8].mxu0 %v1318_v45 }
 0x1be   : > { %v1709_v11 = vpop.permute.xlu1 %1708 }
 0x27b   : > { %v1963_v15 = vpop.f32.mrb[4].mxu0 }
 0x27c   : > { %v1964_v47 = vpop.f32.mrb[5].mxu0 }
 0x27d   : > { %v1965_v12 = vadd.f32 %v1964_v47, %v1963_v15  ;;  %v1966_v39 = vpop.f32.mrb[6].mxu0 }
 0x27e   : > { %v1967_v26 = vpop.f32.mrb[7].mxu0 }
 0x27f   : > { %v1968_v55 = vadd.f32 %v1967_v26, %v1966_v39 }
 0x28a   : > { %v2039_v53 = vpop.f32.mrb[12].mxu1 }
 0x28b   : > { %v1661_v17 = vpop.f32.mrb[13].mxu1 }
 0x28c   : > { %v2042_v6 = vadd.f32 %v1965_v12, %v1661_v17  ;;  %v2040_v42 = vpop.f32.mrb[14].mxu1 }
 0x28d   : > { %v1664_v37 = vpop.f32.mrb[15].mxu1 }
 0x28e   : > { %v1683_v1 = vadd.f32 %v2042_v6, %v1929_v33  ;;  %v2044_v22 = vadd.f32 %v1968_v55, %v1664_v37 }
 0x28f   : > { %v1969_v7 = vpop.f32.mrb[8].mxu0 }
 0x290   : > { %v1711_v40 = vmul.f32 %v1694_v8, %v1683_v1  ;;  %v1684_v4 = vadd.f32 %v2044_v22, %v1929_v33  ;;  %v1970_v62 = vpop.f32.mrb[9].mxu0 }
 0x291   : > { %v1971_v43 = vadd.f32 %v1970_v62, %v1969_v7  ;;  %v1972_v20 = vpop.f32.mrb[10].mxu0 }
 0x292   : > { %v1722_v38 = vmul.f32 %v1930_v35, %v1711_v40  ;;  %v1712_v54 = vmul.f32 %v1699_v63, %v1684_v4  ;;  %v1973_v58 = vpop.f32.mrb[11].mxu0 }
 0x293   : > { %v2041_v5 = vadd.f32 %v2039_v53, %v1971_v43  ;;  %v1974_v51 = vadd.f32 %v1973_v58, %v1972_v20 }
 0x294   : > { %v1733_v59 = vadd.f32 %v1931_v9, %v1722_v38  ;;  %v1723_v14 = vmul.f32 %v1930_v35, %v1712_v54 }
 0x295   : > { %v1685_v31 = vadd.f32 %v2041_v5, %v1929_v33  ;;  %v2043_v57 = vadd.f32 %v2040_v42, %v1974_v51 }
 0x296   : > { %v1737_v60 = vmax.f32 %v1733_v59, 0.0  ;;  %v1734_v27 = vadd.f32 %v1931_v9, %v1723_v14 }
 0x297   : > { %v1713_v44 = vmul.f32 %v1704_v56, %v1685_v31  ;;  %v1686_v30 = vadd.f32 %v2043_v57, %v1929_v33 }
 0x298   : > { %v1741_v2 = vadd.f32 %v2180_v3, %v1737_v60  ;;  %v1738_v41 = vmax.f32 %v1734_v27, 0.0 }
 0x299   : > { %v1724_v10 = vmul.f32 %v1930_v35, %v1713_v44  ;;  %v1714_v61 = vmul.f32 %v1709_v11, %v1686_v30 }
 0x29a   : > { %1745 = vst.msk [vmem:[%s566_s24] sm:$0xff] %vm602_vm0, %v1741_v2  ;;  %v1742_v16 = vadd.f32 %v2181_v18, %v1738_v41 }
 0x29b   : > { %v1735_v21 = vadd.f32 %v1931_v9, %v1724_v10  ;;  %v1725_v19 = vmul.f32 %v1930_v35, %v1714_v61 }
 0x29c   : > { %1746 = vst.msk [vmem:[%s566_s24 + $0x8] sm:$0xff] %vm602_vm0, %v1742_v16 }
 0x29d   : > { %v1739_v32 = vmax.f32 %v1735_v21, 0.0  ;;  %v1736_v23 = vadd.f32 %v1931_v9, %v1725_v19 }
 0x29f   : > { %v1743_v25 = vadd.f32 %v2182_v34, %v1739_v32  ;;  %v1740_v48 = vmax.f32 %v1736_v23, 0.0 }
 0x2a1   : > { %1747 = vst.msk [vmem:[%s566_s24 + $0x10] sm:$0xff] %vm602_vm0, %v1743_v25  ;;  %v1744_v52 = vadd.f32 %v2183_v46, %v1740_v48 }
 0x2a3   : > { %1748 = vst.msk [vmem:[%s566_s24 + $0x18] sm:$0xff] %vm602_vm0, %v1744_v52 }
 0x2a4 PF: > { %p19_p9 = scmp.ge.s32.totalorder %s2295_s25, 4   ;;  %s2935_s21 = smov %s2202_s22 }
 0x2a5   : > { %s2936_s22 = smov %s2304_s28  ;;  %s2937_s23 = smov %s2295_s25 }
 0x2a6   :  { %21 = sbr.rel (!%p19_p9) target bundleno = 2 (0x2), region = 155 }

</bundles_post_ra>
